<compile_context>
chip_gen: v7x
topology: tpu7x:2x2x1
jax: 0.10.0
libtpu: 0.0.40
codegen_flags: <defaults>
</compile_context>

<pallas_src>
import functools
import math

import jax
import jax.numpy as jnp
import numpy as np
from jax.experimental import pallas as pl
from jax.experimental.pallas import tpu as pltpu


# ---------------------------------------------------------------------------
# Helpers
# ---------------------------------------------------------------------------

def _cdiv(a, b):
    return -(-a // b)


def _round_up(x, m):
    return _cdiv(x, m) * m


_TARGET_BLOCK_BYTES = 2 * 1024 * 1024    # ~2 MiB of output per grid step
_MIN_BLOCK_BYTES = 128 * 1024            # don't shrink blocks below this for parallelism
_MIN_PARALLEL_STEPS = 8                  # feed both v7x TCs / amortize per-step cost
_L_MAX = 8192                            # max lane width of the lane-dense path
_ONEHOT_MAX_BYTES = 2 * 1024 * 1024      # cap on the resident one-hot matrix


def _plan_grid(num_rows, row_bytes):
    """Even-split `num_rows` rows into grid steps of `block` rows (mult. of 8)."""
    max_block = max(8, (_TARGET_BLOCK_BYTES // max(row_bytes, 1)) // 8 * 8)
    min_block = max(8, _round_up(max(_MIN_BLOCK_BYTES // max(row_bytes, 1), 1), 8))
    nb = max(
        _cdiv(num_rows, max_block),                                   # VMEM budget
        min(_MIN_PARALLEL_STEPS, max(1, num_rows // min_block)),      # >=2 parallel steps
        1,
    )
    block = min(max_block, _round_up(_cdiv(num_rows, nb), 8))
    nb = _cdiv(num_rows, block)
    return block, nb, block * nb


# ---------------------------------------------------------------------------
# Kernels
# ---------------------------------------------------------------------------

def _time_encode_lane_dense_kernel(use_dot, t_ref, onehot_ref, freq_ref, phase_ref,
                                   out_ref):
    """Lane-dense kernel.

    t_ref:      (bg, g_ts)   g_ts consecutive timestamps per group (L output lanes)
    onehot_ref: (g_ts, L)    exact 0/1 lane->timestamp map (resident)
    freq_ref:   (1, L)       basis_freq[j % dim]               (resident)
    phase_ref:  (1, L)       phase[j % dim]                    (resident)
    out_ref:    (bg, L)      flattened row-major view of the (N, dim) output
    """
    t2 = t_ref[...]                                            # (bg, g_ts) f32
    if use_dot:
        # Exact per-lane timestamp expansion on the (otherwise idle) MXU:
        # one operand is exactly {0.0, 1.0}, so with HIGHEST precision the
        # f32 timestamps are reproduced bit-exactly.
        t_exp = jnp.dot(t2, onehot_ref[...],
                        precision=jax.lax.Precision.HIGHEST,
                        preferred_element_type=jnp.float32)     # (bg, L)
    else:
        # g_ts == 1 (dim is a multiple of 128): plain lane broadcast.
        t_exp = jnp.broadcast_to(t2, out_ref.shape)
    out_ref[...] = jnp.cos(t_exp * freq_ref[...] + phase_ref[...]).astype(out_ref.dtype)


def _time_encode_rows_kernel(t_ref, freq_ref, phase_ref, out_ref):
    """Fallback kernel: one row per timestamp, dim lanes (possibly not 128-dense)."""
    out_ref[...] = jnp.cos(
        t_ref[...] * freq_ref[...] + phase_ref[...]).astype(out_ref.dtype)


# ---------------------------------------------------------------------------
# Wrapper
# ---------------------------------------------------------------------------

@jax.jit
def time_encode_forward(ts, basis_freq, phase):
    """TimeEncode forward: cos(ts[..., None] * basis_freq + phase)."""
    f32 = jnp.float32
    bsz, seq = ts.shape
    dim = basis_freq.shape[0]
    n = bsz * seq
    ts_flat = ts.reshape(n).astype(f32)

    L = (dim * 128) // math.gcd(dim, 128)       # lcm(dim, 128): lane-dense row width
    g_ts = L // dim                             # timestamps per output row-group

    lane_dense = (L <= _L_MAX) and (g_ts * L * 4 <= _ONEHOT_MAX_BYTES)

    compiler_params = pltpu.CompilerParams(
        dimension_semantics=("parallel",),
        vmem_limit_bytes=32 * 1024 * 1024,
    )

    if lane_dense:
        ngroups = _cdiv(n, g_ts)
        bg, nb, ng_pad = _plan_grid(ngroups, L * 4)
        n_pad = ng_pad * g_ts
        if n_pad != n:
            ts_flat = jnp.pad(ts_flat, (0, n_pad - n))
        t2 = ts_flat.reshape(ng_pad, g_ts)                     # free, contiguous

        # Resident parameter tiles (constant index maps keep them in VMEM).
        freq_row = jnp.tile(basis_freq.astype(f32), g_ts).reshape(1, L)
        phase_row = jnp.tile(phase.astype(f32), g_ts).reshape(1, L)
        # Precomputed exact lane->timestamp one-hot (replaces in-kernel
        # iota//dim + the broadcast/select chain).
        grp = np.arange(L, dtype=np.int64) // dim
        onehot = jnp.asarray(
            (np.arange(g_ts, dtype=np.int64)[:, None] == grp[None, :])
            .astype(np.float32))

        use_dot = g_ts > 1
        cost = pl.CostEstimate(
            flops=2 * ng_pad * L * (g_ts + 1),
            transcendentals=ng_pad * L,
            bytes_accessed=4 * (ng_pad * g_ts + (g_ts + 2) * L + ng_pad * L),
        )
        out = pl.pallas_call(
            functools.partial(_time_encode_lane_dense_kernel, use_dot),
            out_shape=jax.ShapeDtypeStruct((ng_pad, L), f32),
            grid=(nb,),
            in_specs=[
                pl.BlockSpec((bg, g_ts), lambda i: (i, 0)),
                pl.BlockSpec((g_ts, L), lambda i: (0, 0)),
                pl.BlockSpec((1, L), lambda i: (0, 0)),
                pl.BlockSpec((1, L), lambda i: (0, 0)),
            ],
            out_specs=pl.BlockSpec((bg, L), lambda i: (i, 0)),
            compiler_params=compiler_params,
            cost_estimate=cost,
        )(t2, onehot, freq_row, phase_row)
        out_flat = out.reshape(-1)[: n * dim]
    else:
        # TODO(synk): lane-dense path for dims whose lcm with 128 is too large.
        block_n, nb, n_pad = _plan_grid(n, dim * 4)
        if n_pad != n:
            ts_flat = jnp.pad(ts_flat, (0, n_pad - n))
        t2 = ts_flat.reshape(n_pad, 1)
        freq_r = basis_freq.astype(f32).reshape(1, dim)
        phase_r = phase.astype(f32).reshape(1, dim)

        cost = pl.CostEstimate(
            flops=2 * n_pad * dim,
            transcendentals=n_pad * dim,
            bytes_accessed=4 * (n_pad + 2 * dim + n_pad * dim),
        )
        out = pl.pallas_call(
            _time_encode_rows_kernel,
            out_shape=jax.ShapeDtypeStruct((n_pad, dim), f32),
            grid=(nb,),
            in_specs=[
                pl.BlockSpec((block_n, 1), lambda i: (i, 0)),
                pl.BlockSpec((1, dim), lambda i: (0, 0)),
                pl.BlockSpec((1, dim), lambda i: (0, 0)),
            ],
            out_specs=pl.BlockSpec((block_n, dim), lambda i: (i, 0)),
            compiler_params=compiler_params,
            cost_estimate=cost,
        )(t2, freq_r, phase_r)
        out_flat = out[:n].reshape(-1)

    return out_flat.reshape(bsz, seq, dim)


# ---------------------------------------------------------------------------
# Reference + parameter init (mirrors the PyTorch module)
# ---------------------------------------------------------------------------

def time_encode_reference(ts, basis_freq, phase):
    return jnp.cos(ts[..., None] * basis_freq + phase)


def init_basis_freq(time_dim):
    return jnp.asarray((1.0 / 10 ** np.linspace(0, 9, time_dim)).astype(np.float32))


# ---------------------------------------------------------------------------
# Self-test
# ---------------------------------------------------------------------------

if __name__ == "__main__":
    key = jax.random.PRNGKey(0)
    keys = jax.random.split(key, 8)

    def check(bsz, seq, dim, *, nonzero_phase, kidx):
        ts = jax.random.uniform(keys[kidx], (bsz, seq), jnp.float32, 0.0, 10.0)
        basis_freq = init_basis_freq(dim)
        if nonzero_phase:
            phase = jax.random.uniform(keys[kidx + 1], (dim,), jnp.float32, -1.0, 1.0)
        else:
            phase = jnp.zeros((dim,), jnp.float32)

        out = jax.block_until_ready(time_encode_forward(ts, basis_freq, phase))
        ref = time_encode_reference(ts, basis_freq, phase)
        assert out.shape == (bsz, seq, dim), (out.shape, (bsz, seq, dim))
        err = float(jnp.max(jnp.abs(out - ref)))
        assert jnp.allclose(out, ref, atol=1e-4, rtol=1e-4), (
            f"mismatch for time_dim={dim}: max abs err {err}")

    # 128 % dim == 0 path (g_ts = 4, G_rows = 1): the common TimeEncode size.
    check(4, 64, 32, nonzero_phase=False, kidx=0)
    # General lcm path, dim does not divide 128 (g_ts = 8, G_rows = 3).
    check(2, 16, 48, nonzero_phase=True, kidx=2)
    # General lcm path with larger groups (dim=100: g_ts = 32, G_rows = 25).
    check(2, 8, 100, nonzero_phase=False, kidx=4)
    # Fallback rows kernel (lcm(101,128) too large for the lane-dense path).
    check(2, 8, 101, nonzero_phase=True, kidx=6)

    print("KERNEL_OK")
</pallas_src>

<mosaic_0001>
module attributes {stable_mosaic.version = 11 : i64} {
  func.func @_time_encode_lane_dense_kernel(%arg0: i32, %arg1: memref<64x4xf32, #tpu.memory_space<vmem>>, %arg2: memref<4x128xf32, #tpu.memory_space<vmem>>, %arg3: memref<1x128xf32, #tpu.memory_space<vmem>>, %arg4: memref<1x128xf32, #tpu.memory_space<vmem>>, %arg5: memref<64x128xf32, #tpu.memory_space<vmem>>) attributes {dimension_semantics = [#tpu.dimension_semantics<parallel>], iteration_bounds = array<i64: 1>, scalar_prefetch = 0 : i64, scratch_operands = 0 : i64, tpu.core_type = #tpu.core_type<tc>, window_params = [{transform_indices = @transform_0, window_bounds = array<i64: 64, 4>}, {pipeline_mode = #tpu.pipeline_mode<synchronous>, transform_indices = @transform_1, window_bounds = array<i64: 4, 128>}, {pipeline_mode = #tpu.pipeline_mode<synchronous>, transform_indices = @transform_2, window_bounds = array<i64: 1, 128>}, {pipeline_mode = #tpu.pipeline_mode<synchronous>, transform_indices = @transform_3, window_bounds = array<i64: 1, 128>}, {transform_indices = @transform_4, window_bounds = array<i64: 64, 128>}]} {
    %c0 = arith.constant 0 : index
    %c0_0 = arith.constant 0 : index
    %0 = vector.load %arg1[%c0, %c0_0] : memref<64x4xf32, #tpu.memory_space<vmem>>, vector<64x4xf32>
    %c0_1 = arith.constant 0 : index
    %c0_2 = arith.constant 0 : index
    %1 = vector.load %arg2[%c0_1, %c0_2] : memref<4x128xf32, #tpu.memory_space<vmem>>, vector<4x128xf32>
    %cst = arith.constant dense<0.000000e+00> : vector<64x128xf32>
    %2 = tpu.matmul %0, %1, %cst {dimension_numbers = #tpu.dot_dimension_numbers<[1], [0], [0], [1], [0, 0, 1, 1], [], []>, precision = #tpu.contract_precision<fp32>} : vector<64x4xf32>, vector<4x128xf32>, vector<64x128xf32> -> vector<64x128xf32>
    %c0_3 = arith.constant 0 : index
    %c0_4 = arith.constant 0 : index
    %3 = vector.load %arg3[%c0_3, %c0_4] : memref<1x128xf32, #tpu.memory_space<vmem>>, vector<1x128xf32>
    %4 = vector.broadcast %3 : vector<1x128xf32> to vector<64x128xf32>
    %5 = arith.mulf %2, %4 : vector<64x128xf32>
    %c0_5 = arith.constant 0 : index
    %c0_6 = arith.constant 0 : index
    %6 = vector.load %arg4[%c0_5, %c0_6] : memref<1x128xf32, #tpu.memory_space<vmem>>, vector<1x128xf32>
    %7 = vector.broadcast %6 : vector<1x128xf32> to vector<64x128xf32>
    %8 = arith.addf %5, %7 : vector<64x128xf32>
    %9 = math.cos %8 : vector<64x128xf32>
    %c0_7 = arith.constant 0 : index
    %c0_8 = arith.constant 0 : index
    %10 = vector.load %arg5[%c0_7, %c0_8] : memref<64x128xf32, #tpu.memory_space<vmem>>, vector<64x128xf32>
    tpu.vector_store %arg5[%c0_7, %c0_8], %9 {strides = array<i32>} : memref<64x128xf32, #tpu.memory_space<vmem>>, vector<64x128xf32>,
    return
  }
  func.func @transform_0(%arg0: i32) -> (i32, i32) {
    %c0_i32 = arith.constant 0 : i32
    %c0_i32_0 = arith.constant 0 : i32
    return %arg0, %c0_i32 : i32, i32
  }
  func.func @transform_1(%arg0: i32) -> (i32, i32) {
    %c0_i32 = arith.constant 0 : i32
    %c0_i32_0 = arith.constant 0 : i32
    %c0_i32_1 = arith.constant 0 : i32
    return %c0_i32, %c0_i32_0 : i32, i32
  }
  func.func @transform_2(%arg0: i32) -> (i32, i32) {
    %c0_i32 = arith.constant 0 : i32
    %c0_i32_0 = arith.constant 0 : i32
    %c0_i32_1 = arith.constant 0 : i32
    return %c0_i32, %c0_i32_0 : i32, i32
  }
  func.func @transform_3(%arg0: i32) -> (i32, i32) {
    %c0_i32 = arith.constant 0 : i32
    %c0_i32_0 = arith.constant 0 : i32
    %c0_i32_1 = arith.constant 0 : i32
    return %c0_i32, %c0_i32_0 : i32, i32
  }
  func.func @transform_4(%arg0: i32) -> (i32, i32) {
    %c0_i32 = arith.constant 0 : i32
    %c0_i32_0 = arith.constant 0 : i32
    return %arg0, %c0_i32 : i32, i32
  }
}

</mosaic_0001>

<bundles_post_ra>
// kernel: tile.13
= control target key start
LH: loop header
LB: loop body
LE: loop exit
PB: predicated region body
PF: predicated region fallthrough
CT: control target
= control target key end

     0   :  { %s22_s0 = inlined_call_operand.vmem [shape: f32[32], index: 0, kind: input, shape index: {}]   ;;  %s23_s1 = inlined_call_operand.vmem [shape: f32[4,32], index: 1, kind: output, shape index: {}]  }
   0x1   :  { %v4_v0 = vld [vmem:[%s22_s0] ss:$0 sm:$0xff] }
   0x2   :  { %5 = vst [vmem:[%s23_s1] sm:$0xf] %v4_v0 }

// kernel: tile.14
= control target key start
LH: loop header
LB: loop body
LE: loop exit
PB: predicated region body
PF: predicated region fallthrough
CT: control target
= control target key end

     0   :  { %vm7_vm0 = vcmask 261120   ;;  %s37_s8 = smov 32   ;;  %s38_s9 = smov 64   ;;  %vm13_vm1 = vcmask 1048320   ;;  %vm19_vm2 = vcmask 785920   ;;  %vm25_vm3 = vcmask 523520   ;;  %s55_s0 = inlined_call_operand.vmem [shape: f32[4,32], index: 0, kind: input, shape index: {}]   ;;  %s56_s1 = inlined_call_operand.vmem [shape: f32[1,128], index: 1, kind: output, shape index: {}]  }
   0x1   :  { %v4_v0 = vld [vmem:[%s55_s0] sm:$0xf]  ;;  %s36_s0 = smov 96  }
   0x2   :  { %5 = vst [vmem:[#allocation1] sm:$0xf] %v4_v0 }
   0x9   :  { %v10_v1 = vld [vmem:[#allocation1 + $0x3] sm:$0x1]   ;;  %v22_v2 = vld [vmem:[#allocation1 + $0x1] sm:$0x1]   ;;  %v6_v3 = vld [vmem:[#allocation1] sm:$0x1]  }
   0xa   :  { %11 = vrot.lane.b32.xlu0 %v10_v1, %s36_s0  ;;  %23 = vrot.lane.b32.xlu1 %v22_v2, %s37_s8  ;;  %v16_v4 = vld [vmem:[#allocation1 + $0x2] sm:$0x1]   ;;  %8 = vst.msk [vmem:[#allocation0] sm:$0x1] %vm7_vm0, %v6_v3  }
   0xe   :  { %17 = vrot.lane.b32.xlu0 %v16_v4, %s38_s9 }
  0x7c   :  { %v12_v5 = vpop.permute.xlu0 %11   ;;  %v24_v6 = vpop.permute.xlu1 %23  }
  0x7d   :  { %14 = vst.msk [vmem:[#allocation0] sm:$0x1] %vm13_vm1, %v12_v5  }
  0x80   :  { %v18_v7 = vpop.permute.xlu0 %17  }
  0x81   :  { %20 = vst.msk [vmem:[#allocation0] sm:$0x1] %vm19_vm2, %v18_v7  }
  0x82   :  { %26 = vst.msk [vmem:[#allocation0] sm:$0x1] %vm25_vm3, %v24_v6  }
  0x89   :  { %v30_v8 = vld [vmem:[#allocation0] sm:$0x1] }
  0x8a   :  { %32 = vst [vmem:[%s56_s1] sm:$0x1] %v30_v8 }

// kernel: time_encode_forward.1
= control target key start
LH: loop header
LB: loop body
LE: loop exit
PB: predicated region body
PF: predicated region fallthrough
CT: control target
= control target key end

     0   :  { %vm51_vm0 = vcmask 1043456   ;;  %vm26_vm1 = vcmask 31744   ;;  %s2819_s1 = inlined_call_operand.vmem [shape: f32[4,128], index: 1, kind: input, shape index: {}]   ;;  %s2820_s0 = inlined_call_operand.vmem [shape: f32[64,4], index: 0, kind: input, shape index: {}]   ;;  %s2821_s2 = inlined_call_operand.vmem [shape: f32[1,128], index: 2, kind: input, shape index: {}]   ;;  %s2822_s3 = inlined_call_operand.vmem [shape: f32[1,128], index: 3, kind: input, shape index: {}]   ;;  %s2823_s4 = inlined_call_operand.vmem [shape: f32[64,128], index: 4, kind: output, shape index: {}]  }
   0x1   :  { %v25_v0 = vld [vmem:[%s2819_s1] sm:$0xf]  ;;  %v18_v2 = vld [vmem:[%s2820_s0 + $0x8] sm:$0xff]  ;;  %v19_v6 = vld [vmem:[%s2820_s0 + $0x10] sm:$0xff] }
   0x2   :  { %v17_v1 = vld [vmem:[%s2820_s0] sm:$0xff]  ;;  %v53_v3 = vsel %vm51_vm0, %v25_v0, 0  ;;  %v31_v5 = vsel %vm26_vm1, %v18_v2, 0  ;;  %v20_v7 = vld [vmem:[%s2820_s0 + $0x18] sm:$0xff]  ;;  %v34_v12 = vsel %vm26_vm1, %v19_v6, 0  ;;  %v22_v13 = vld [vmem:[%s2820_s0 + $0x28] sm:$0xff] }
   0x3   :  { %v28_v4 = vsel %vm26_vm1, %v17_v1, 0  ;;  %v21_v8 = vld [vmem:[%s2820_s0 + $0x20] sm:$0xff]  ;;  %v2003_v9 = vand.u32 4294901760, %v53_v3  ;;  %v2007_v11 = vand.u32 4294901760, %v31_v5  ;;  %v23_v14 = vld [vmem:[%s2820_s0 + $0x30] sm:$0xff]  ;;  %v2016_v15 = vand.u32 4294901760, %v34_v12 }
   0x4   :  { %v2005_v10 = vand.u32 4294901760, %v28_v4  ;;  %v37_v16 = vsel %vm26_vm1, %v20_v7, 0  ;;  %v40_v17 = vsel %vm26_vm1, %v21_v8, 0  ;;  %v43_v18 = vsel %vm26_vm1, %v22_v13, 0  ;;  %v24_v43 = vld [vmem:[%s2820_s0 + $0x38] sm:$0xff] }
   0x5   :  { %1798 = vmatprep.subr.mxu0 %v2003_v9  ;;  %v2026_v20 = vsub.f32 %v31_v5, %v2007_v11  ;;  %1756 = vmatprep.subr.mxu1 %v2003_v9  ;;  %v2030_v21 = vsub.f32 %v53_v3, %v2003_v9  ;;  %v2032_v22 = vand.u32 4294901760, %v37_v16  ;;  %v2037_v23 = vsub.f32 %v34_v12, %v2016_v15  ;;  %v2113_v2 = vld [vmem:[%s2821_s2] ss:$0 sm:$0xff] }
   0x6   :  { %v2023_v19 = vsub.f32 %v28_v4, %v2005_v10  ;;  %1799 = vmatpush3.msra.mxu0 %v2003_v9  ;;  %1757 = vmatpush3.msra.mxu1 %v2003_v9  ;;  %v2039_v24 = vand.u32 4294901760, %v40_v17  ;;  %v2041_v25 = vand.u32 4294901760, %v43_v18  ;;  %v46_v26 = vsel %vm26_vm1, %v23_v14, 0  ;;  %v2118_v7 = vld [vmem:[%s2822_s3] ss:$0 sm:$0xff] }
   0x7   :  { %v133_v28 = vand.u32 4294901760, %v2026_v20  ;;  %v204_v29 = vand.u32 4294901760, %v2030_v21  ;;  %v2048_v30 = vsub.f32 %v37_v16, %v2032_v22  ;;  %v143_v31 = vand.u32 4294901760, %v2037_v23 }
   0x8   :  { %v123_v27 = vand.u32 4294901760, %v2023_v19  ;;  %v2052_v32 = vsub.f32 %v40_v17, %v2039_v24  ;;  %v2055_v33 = vsub.f32 %v43_v18, %v2041_v25  ;;  %v2057_v34 = vand.u32 4294901760, %v46_v26 }
   0x9   :  { %v205_v36 = vsub.f32 %v2030_v21, %v204_v29  ;;  %1812 = vmatprep.subr.mxu0 %v204_v29  ;;  %v134_v37 = vsub.f32 %v2026_v20, %v133_v28  ;;  %v153_v38 = vand.u32 4294901760, %v2048_v30  ;;  %v144_v39 = vsub.f32 %v2037_v23, %v143_v31 }
   0xa   :  { %1800 = vmatprep.mubr.f32.mxu0 %v123_v27  ;;  %v124_v35 = vsub.f32 %v2023_v19, %v123_v27  ;;  %v163_v40 = vand.u32 4294901760, %v2052_v32  ;;  %v173_v41 = vand.u32 4294901760, %v2055_v33  ;;  %v2067_v42 = vsub.f32 %v46_v26, %v2057_v34 }
   0xb   :  { %1801 = vmatmul.mubr.f32.vlgmr.msra.gmra.mrb[0].mxu0 %v133_v28  ;;  %v206_v45 = vand.u32 4294901760, %v205_v36  ;;  %v135_v46 = vand.u32 4294901760, %v134_v37  ;;  %v154_v47 = vsub.f32 %v2048_v30, %v153_v38  ;;  %v145_v48 = vand.u32 4294901760, %v144_v39 }
   0xc   :  { %v125_v44 = vand.u32 4294901760, %v124_v35  ;;  %1803 = vmatprep.mubr.f32.mxu0 %v143_v31  ;;  %1813 = vmatpush3.msra.mxu0 %v204_v29  ;;  %v164_v49 = vsub.f32 %v2052_v32, %v163_v40  ;;  %v183_v50 = vand.u32 4294901760, %v2067_v42  ;;  %v49_v51 = vsel %vm26_vm1, %v24_v43, 0 }
   0xd   :  { %1826 = vmatprep.subr.mxu0 %v2003_v9  ;;  %1770 = vmatprep.subr.mxu1 %v206_v45  ;;  %v155_v52 = vand.u32 4294901760, %v154_v47  ;;  %v174_v53 = vsub.f32 %v2055_v33, %v173_v41  ;;  %v191_v54 = vand.u32 4294901760, %v49_v51 }
   0xe   :  { %1758 = vmatprep.mubr.f32.mxu1 %v125_v44  ;;  %v165_v55 = vand.u32 4294901760, %v164_v49  ;;  %v184_v56 = vsub.f32 %v2067_v42, %v183_v50 }
   0xf   :  { %1759 = vmatmul.mubr.f32.vlgmr.msra.gmra.mrb[0].mxu1 %v135_v46  ;;  %1804 = vmatmul.mubr.f32.gmra.mrb[2].mxu0 %v153_v38  ;;  %v192_v57 = vsub.f32 %v49_v51, %v191_v54  ;;  %v175_v58 = vand.u32 4294901760, %v174_v53 }
  0x10   :  { %1771 = vmatpush3.msra.mxu1 %v206_v45  ;;  %1761 = vmatprep.mubr.f32.mxu1 %v145_v48  ;;  %v185_v60 = vand.u32 4294901760, %v184_v56  ;;  %v1952_v56 = vmov 683565275  }
  0x11   :  { %1806 = vmatprep.mubr.f32.mxu0 %v163_v40  ;;  %1784 = vmatprep.subr.mxu1 %v2030_v21  ;;  %v193_v59 = vand.u32 4294901760, %v192_v57 }
  0x13   :  { %1762 = vmatmul.mubr.f32.gmra.mrb[2].mxu1 %v155_v52  ;;  %1807 = vmatmul.mubr.f32.gmra.mrb[4].mxu0 %v173_v41  ;;  %v194_v61 = vsub.f32 %v192_v57, %v193_v59 }
  0x14   :  { %1764 = vmatprep.mubr.f32.mxu1 %v165_v55  ;;  %1809 = vmatprep.mubr.f32.mxu0 %v183_v50 }
  0x15   :  { %v195_v62 = vand.u32 4294901760, %v194_v61 }
  0x17   :  { %1765 = vmatmul.mubr.f32.gmra.mrb[4].mxu1 %v175_v58  ;;  %1810 = vmatmul.mubr.f32.gmra.mrb[6].mxu0 %v193_v59 }
  0x18   :  { %1767 = vmatprep.mubr.f32.mxu1 %v185_v60  ;;  %1814 = vmatprep.mubr.f32.mxu0 %v2005_v10  ;;  %v1953_v60 = vmov 2475754826  }
  0x1b   :  { %1768 = vmatmul.mubr.f32.gmra.mrb[6].mxu1 %v195_v62  ;;  %1815 = vmatmul.mubr.f32.vlgmr.msra.gmra.mrb[0].mxu0 %v2007_v11  ;;  %v1954_v62 = vmov 2131351028  }
  0x1c   :  { %1772 = vmatprep.mubr.f32.mxu1 %v2005_v10  ;;  %1817 = vmatprep.mubr.f32.mxu0 %v2016_v15 }
  0x1d   :  { %1827 = vmatpush3.msra.mxu0 %v2003_v9 }
  0x1f   :  { %1773 = vmatmul.mubr.f32.vlgmr.msra.gmra.mrb[0].mxu1 %v2007_v11  ;;  %1818 = vmatmul.mubr.f32.gmra.mrb[2].mxu0 %v2032_v22 }
  0x20   :  { %1785 = vmatpush3.msra.mxu1 %v2030_v21  ;;  %1775 = vmatprep.mubr.f32.mxu1 %v2016_v15 }
  0x21   :  { %1820 = vmatprep.mubr.f32.mxu0 %v2039_v24 }
  0x23   :  { %1776 = vmatmul.mubr.f32.gmra.mrb[2].mxu1 %v2032_v22  ;;  %1821 = vmatmul.mubr.f32.gmra.mrb[4].mxu0 %v2041_v25 }
  0x24   :  { %1778 = vmatprep.mubr.f32.mxu1 %v2039_v24  ;;  %1823 = vmatprep.mubr.f32.mxu0 %v2057_v34 }
  0x27   :  { %1779 = vmatmul.mubr.f32.gmra.mrb[4].mxu1 %v2041_v25  ;;  %1824 = vmatmul.mubr.f32.gmra.mrb[6].mxu0 %v191_v54 }
  0x28   :  { %1781 = vmatprep.mubr.f32.mxu1 %v2057_v34  ;;  %1828 = vmatprep.mubr.f32.mxu0 %v2005_v10 }
  0x2b   :  { %1782 = vmatmul.mubr.f32.gmra.mrb[6].mxu1 %v191_v54  ;;  %1829 = vmatmul.mubr.f32.vlgmr.msra.gmra.mrb[0].mxu0 %v2007_v11 }
  0x2c   :  { %1786 = vmatprep.mubr.f32.mxu1 %v2023_v19  ;;  %1831 = vmatprep.mubr.f32.mxu0 %v2016_v15 }
  0x2f   :  { %1787 = vmatmul.mubr.f32.vlgmr.msra.gmra.mrb[0].mxu1 %v2026_v20  ;;  %1832 = vmatmul.mubr.f32.gmra.mrb[2].mxu0 %v2032_v22 }
  0x30   :  { %1789 = vmatprep.mubr.f32.mxu1 %v2037_v23  ;;  %1834 = vmatprep.mubr.f32.mxu0 %v2039_v24 }
  0x33   :  { %1790 = vmatmul.mubr.f32.gmra.mrb[2].mxu1 %v2048_v30  ;;  %1835 = vmatmul.mubr.f32.gmra.mrb[4].mxu0 %v2041_v25 }
  0x34   :  { %1792 = vmatprep.mubr.f32.mxu1 %v2052_v32  ;;  %1837 = vmatprep.mubr.f32.mxu0 %v2057_v34 }
  0x37   :  { %1793 = vmatmul.mubr.f32.gmra.mrb[4].mxu1 %v2055_v33  ;;  %1838 = vmatmul.mubr.f32.gmra.mrb[6].mxu0 %v191_v54 }
  0x38   :  { %1795 = vmatprep.mubr.f32.mxu1 %v2067_v42 }
  0x3b   :  { %1796 = vmatmul.mubr.f32.gmra.mrb[6].mxu1 %v192_v57 }
  0xfe   :  { %v1830_v63 = vpop.f32.mrb[0].mxu0 }
  0xff   :  { %v756_v0 = vpop.f32.mrb[1].mxu0 }
 0x102   :  { %v1788_v1 = vpop.f32.mrb[0].mxu1  ;;  %v1833_v3 = vpop.f32.mrb[2].mxu0 }
 0x103   :  { %v1840_v4 = vadd.f32 %v1830_v63, %v1788_v1  ;;  %v389_v5 = vpop.f32.mrb[1].mxu1  ;;  %v768_v6 = vpop.f32.mrb[3].mxu0 }
 0x104   :  { %v1841_v8 = vadd.f32 %v756_v0, %v389_v5  ;;  %v1955_v0 = vmov 2102212464  }
 0x105   :  { %v810_v9 = vmul.f32 %v1840_v4, %v2113_v2 }
 0x106   :  { %v809_v10 = vmul.f32 %v1841_v8, %v2113_v2  ;;  %v1791_v11 = vpop.f32.mrb[2].mxu1  ;;  %v1836_v12 = vpop.f32.mrb[4].mxu0 }
 0x107   :  { %v2123_v13 = vadd.f32 %v2118_v7, %v810_v9  ;;  %v1842_v14 = vadd.f32 %v1833_v3, %v1791_v11  ;;  %v403_v15 = vpop.f32.mrb[3].mxu1  ;;  %v780_v16 = vpop.f32.mrb[5].mxu0  ;;  %v1956_v3 = vmov 920167782   ;;  %v1957_v11 = vmov 1326507024  }
 0x108   :  { %v2126_v17 = vadd.f32 %v2118_v7, %v809_v10  ;;  %v1843_v18 = vadd.f32 %v768_v6, %v403_v15 }
 0x109   :  { %v935_v19 = vand.u32 2147483647, %v2123_v13  ;;  %v938_v20 = vand.u32 2139095040, %v2123_v13  ;;  %v812_v27 = vmul.f32 %v1842_v14, %v2113_v2  ;;  %vm937_vm0 = vcmp.lt.s32.totalorder %v2123_v13, 0 }
 0x10a   :  { %v832_v21 = vand.u32 2147483647, %v2126_v17  ;;  %v835_v22 = vand.u32 2139095040, %v2126_v17  ;;  %v1794_v23 = vpop.f32.mrb[4].mxu1  ;;  %v2132_v24 = vpop.f32.mrb[6].mxu0  ;;  %v2155_v50 = vmul.f32 %v1843_v18, %v2113_v2 }
 0x10b   :  { %v939_v25 = vshrl.u32 %v938_v20, 23  ;;  %v942_v26 = vand.u32 8388607, %v935_v19  ;;  %v417_v28 = vpop.f32.mrb[5].mxu1  ;;  %v2139_v31 = vpop.f32.mrb[7].mxu0  ;;  %v2142_v33 = vadd.f32 %v2118_v7, %v812_v27  ;;  %v2144_v34 = vadd.f32 %v1836_v12, %v1794_v23 }
 0x10c   :  { %v836_v29 = vshrl.u32 %v835_v22, 23  ;;  %v839_v30 = vand.u32 8388607, %v832_v21  ;;  %v2146_v36 = vadd.f32 %v780_v16, %v417_v28 }
 0x10d   :  { %v1674_v32 = vadd.s32 4294967169, %v939_v25  ;;  %v943_v38 = vor.u32 8388608, %v942_v26  ;;  %v1141_v43 = vand.u32 2147483647, %v2142_v33  ;;  %v1144_v44 = vand.u32 2139095040, %v2142_v33 }
 0x10e   :  { %v1670_v35 = vadd.s32 4294967169, %v836_v29  ;;  %v2148_v37 = vpop.f32.mrb[6].mxu1  ;;  %v840_v41 = vor.u32 8388608, %v839_v30 }
 0x10f   :  { %v945_v39 = vadd.s32 1, %v1674_v32  ;;  %v2150_v40 = vpop.f32.mrb[7].mxu1  ;;  %v1145_v46 = vshrl.u32 %v1144_v44, 23  ;;  %v2157_v51 = vshll.u32 %v943_v38, 8  ;;  %v2165_v54 = vand.u32 8388607, %v1141_v43 }
 0x110   :  { %v842_v42 = vadd.s32 1, %v1670_v35  ;;  %v2161_v53 = vshll.u32 %v840_v41, 8 }
 0x111   :  { %vm946_vm2 = vcmp.gt.s32.totalorder %v945_v39, 0  ;;  %v2168_v59 = vadd.s32 4294967169, %v1145_v46 }
 0x112   :  { %v947_v45 = vsel %vm946_vm2, %v945_v39, 0  ;;  %vm843_vm3 = vcmp.gt.s32.totalorder %v842_v42, 0  ;;  %vm834_vm2 = vcmp.lt.s32.totalorder %v2126_v17, 0 }
 0x113   :  { %v948_v47 = vshrl.u32 %v947_v45, 5  ;;  %v949_v48 = vand.u32 31, %v947_v45  ;;  %v844_v49 = vsel %vm843_vm3, %v842_v42, 0 }
 0x114   :  { %v2159_v52 = vshrl.u32 %v844_v49, 5  ;;  %v846_v58 = vand.u32 31, %v844_v49 }
 0x115   :  { %v950_v55 = vsub.s32 32, %v949_v48  ;;  %v952_v57 = vshll.u32 %v1952_v56, %v949_v48  ;;  %v955_v61 = vshll.u32 %v1953_v60, %v949_v48  ;;  %v958_v63 = vshll.u32 %v1954_v62, %v949_v48 }
 0x116   :  { %v961_v1 = vshll.u32 %v1955_v0, %v949_v48  ;;  %v964_v4 = vshll.u32 %v1956_v3, %v949_v48  ;;  %vm967_vm4 = vcmp.lt.s32.totalorder %v948_v47, 1  ;;  %vm968_vm5 = vcmp.lt.s32.totalorder %v948_v47, 2 }
 0x117   :  { %v953_v5 = vshrl.u32 %v1953_v60, %v950_v55  ;;  %v956_v6 = vshrl.u32 %v1954_v62, %v950_v55  ;;  %v959_v8 = vshrl.u32 %v1955_v0, %v950_v55  ;;  %v951_v9 = vshrl.u32 %v1952_v56, %v950_v55 }
 0x118   :  { %v962_v10 = vshrl.u32 %v1956_v3, %v950_v55  ;;  %v965_v12 = vshrl.u32 %v1957_v11, %v950_v55  ;;  %v847_v18 = vsub.s32 32, %v846_v58  ;;  %vm969_vm6 = vcmp.lt.s32.totalorder %v948_v47, 3 }
 0x119   :  { %v954_v14 = vor.u32 %v953_v5, %v952_v57  ;;  %v957_v15 = vor.u32 %v956_v6, %v955_v61  ;;  %v960_v16 = vor.u32 %v959_v8, %v958_v63  ;;  %vm970_vm7 = vcmp.lt.s32.totalorder %v948_v47, 4 }
 0x11a   :  { %v963_v20 = vor.u32 %v962_v10, %v961_v1  ;;  %v966_v22 = vor.u32 %v965_v12, %v964_v4  ;;  %v849_v32 = vshll.u32 %v1952_v56, %v846_v58  ;;  %v850_v39 = vshrl.u32 %v1953_v60, %v847_v18 }
 0x11b   :  { %v971_v23 = vsel %vm967_vm4, %v951_v9, %v954_v14  ;;  %v972_v25 = vsel %vm970_vm7, %v960_v16, 2102212464  ;;  %v975_v26 = vsel %vm967_vm4, %v954_v14, %v957_v15  ;;  %v979_v27 = vsel %vm967_vm4, %v957_v15, %v960_v16 }
 0x11c   :  { %v973_v28 = vsel %vm969_vm6, %v957_v15, %v972_v25  ;;  %v976_v29 = vsel %vm970_vm7, %v963_v20, 920167782  ;;  %v980_v30 = vsel %vm970_vm7, %v966_v22, 1326507024  ;;  %v852_v41 = vshll.u32 %v1953_v60, %v846_v58 }
 0x11d   :  { %v977_v35 = vsel %vm969_vm6, %v960_v16, %v976_v29  ;;  %v981_v38 = vsel %vm969_vm6, %v963_v20, %v980_v30  ;;  %v974_v42 = vsel %vm968_vm5, %v971_v23, %v973_v28  ;;  %v853_v46 = vshrl.u32 %v1954_v62, %v847_v18 }
 0x11e   :  { %v978_v44 = vsel %vm968_vm5, %v975_v26, %v977_v35  ;;  %v982_v45 = vsel %vm968_vm5, %v979_v27, %v981_v38  ;;  %v851_v61 = vor.u32 %v850_v39, %v849_v32  ;;  %v855_v1 = vshll.u32 %v1954_v62, %v846_v58 }
 0x11f   :  { %v2191_v48 = vmul.u32.u64.low %v2157_v51, %v982_v45  ;;  %v2192_v49 = vmul.u32.u64.high %v2157_v51, %v982_v45, %v2191_v48  ;;  %v2195_v55 = vmul.u32.u64.low %v2157_v51, %v978_v44  ;;  %v2196_v57 = vmul.u32.u64.high %v2157_v51, %v978_v44, %v2195_v55 }
 0x120   :  { %v854_v63 = vor.u32 %v853_v46, %v852_v41  ;;  %v856_v4 = vshrl.u32 %v1955_v0, %v847_v18  ;;  %v848_v5 = vshrl.u32 %v1952_v56, %v847_v18  ;;  %v858_v47 = vshll.u32 %v1955_v0, %v846_v58 }
 0x121   :  { %v859_v6 = vshrl.u32 %v1956_v3, %v847_v18  ;;  %v862_v8 = vshrl.u32 %v1957_v11, %v847_v18  ;;  %v990_v9 = vmul.u32 %v2157_v51, %v974_v42  ;;  %v861_v12 = vshll.u32 %v1956_v3, %v846_v58 }
 0x122   :  { %v857_v10 = vor.u32 %v856_v4, %v855_v1  ;;  %vm864_vm8 = vcmp.lt.s32.totalorder %v2159_v52, 1  ;;  %vm992_vm9 = vc.u32 %v2192_v49, %v2195_v55  ;;  %v993_v14 = vadd.s32 1, %v2196_v57 }
 0x123   :  { %v860_v15 = vor.u32 %v859_v6, %v858_v47  ;;  %vm865_vm10 = vcmp.lt.s32.totalorder %v2159_v52, 2  ;;  %v863_v16 = vor.u32 %v862_v8, %v861_v12  ;;  %vm866_vm11 = vcmp.lt.s32.totalorder %v2159_v52, 3 }
 0x124   :  { %vm867_vm12 = vcmp.lt.s32.totalorder %v2159_v52, 4  ;;  %v872_v18 = vsel %vm864_vm8, %v851_v61, %v854_v63  ;;  %v994_v51 = vsel %vm992_vm9, %v993_v14, %v2196_v57  ;;  %v876_v58 = vsel %vm864_vm8, %v854_v63, %v857_v10 }
 0x125   :  { %v869_v20 = vsel %vm867_vm12, %v857_v10, 2102212464  ;;  %v873_v22 = vsel %vm867_vm12, %v860_v15, 920167782  ;;  %v995_v23 = vadd.s32 %v994_v51, %v990_v9  ;;  %v868_v25 = vsel %vm864_vm8, %v848_v5, %v851_v61 }
 0x126   :  { %v874_v26 = vsel %vm866_vm11, %v857_v10, %v873_v22  ;;  %v877_v27 = vsel %vm867_vm12, %v863_v16, 1326507024  ;;  %v870_v28 = vsel %vm866_vm11, %v854_v63, %v869_v20  ;;  %v1151_v32 = vadd.s32 1, %v2168_v59 }
 0x127   :  { %v875_v29 = vsel %vm865_vm10, %v872_v18, %v874_v26  ;;  %v878_v30 = vsel %vm866_vm11, %v860_v15, %v877_v27  ;;  %v996_v35 = vadd.s32 536870912, %v995_v23  ;;  %v2228_v45 = vadd.f32 %v2118_v7, %v2155_v50 }
 0x128   :  { %v879_v38 = vsel %vm865_vm10, %v876_v58, %v878_v30  ;;  %v2219_v39 = vmul.u32.u64.low %v2161_v53, %v875_v29  ;;  %v2220_v41 = vmul.u32.u64.high %v2161_v53, %v875_v29, %v2219_v39  ;;  %vm1152_vm13 = vcmp.gt.s32.totalorder %v1151_v32, 0 }
 0x129   :  { %v2223_v42 = vmul.u32.u64.low %v2161_v53, %v879_v38  ;;  %v2224_v44 = vmul.u32.u64.high %v2161_v53, %v879_v38, %v2223_v42  ;;  %v2230_v46 = vshrl.u32 %v996_v35, 30  ;;  %v871_v59 = vsel %vm865_vm10, %v868_v25, %v870_v28 }
 0x12a   :  { %v1153_v48 = vsel %vm1152_vm13, %v1151_v32, 0  ;;  %v890_v63 = vadd.s32 1, %v2220_v41  ;;  %v1149_v1 = vor.u32 8388608, %v2165_v54  ;;  %v887_v4 = vmul.u32 %v2161_v53, %v871_v59 }
 0x12b   :  { %v1155_v57 = vand.u32 31, %v1153_v48  ;;  %v998_v61 = vshll.u32 %v2230_v46, 30  ;;  %vm889_vm14 = vc.u32 %v2224_v44, %v2219_v39  ;;  %v1038_v50 = vand.u32 2147483647, %v2228_v45 }
 0x12c   :  { %v891_v52 = vsel %vm889_vm14, %v890_v63, %v2220_v41  ;;  %v1041_v8 = vand.u32 2139095040, %v2228_v45  ;;  %v991_v9 = vadd.s32 %v2195_v55, %v2192_v49  ;;  %v2246_v12 = vshll.u32 %v1149_v1, 8 }
 0x12d   :  { %v1156_v5 = vsub.s32 32, %v1155_v57  ;;  %v2240_v47 = vsub.s32 %v995_v23, %v998_v61  ;;  %v892_v6 = vadd.s32 %v891_v52, %v887_v4  ;;  %v2248_v53 = vshrl.u32 %v1153_v48, 5 }
 0x12e   :  { %v2253_v15 = vand.u32 8388607, %v1038_v50  ;;  %v1021_v18 = vsub.s32 4, %v2230_v46  ;;  %v1164_v20 = vshll.u32 %v1954_v62, %v1155_v57  ;;  %v1042_v58 = vshrl.u32 %v1041_v8, 23 }
 0x12f   :  { %v1001_v10 = vsub.s32 0, %v2240_v47  ;;  %v893_v54 = vadd.s32 536870912, %v892_v6  ;;  %v1165_v14 = vshrl.u32 %v1955_v0, %v1156_v5  ;;  %v1159_v51 = vshrl.u32 %v1953_v60, %v1156_v5 }
 0x130   :  { %v1162_v49 = vshrl.u32 %v1954_v62, %v1156_v5  ;;  %v1168_v22 = vshrl.u32 %v1956_v3, %v1156_v5  ;;  %v1158_v25 = vshll.u32 %v1952_v56, %v1155_v57  ;;  %v1161_v26 = vshll.u32 %v1953_v60, %v1155_v57 }
 0x131   :  { %v1675_v16 = vmin.u32 %v1001_v10, %v2240_v47  ;;  %v894_v55 = vshrl.u32 %v893_v54, 30  ;;  %v1167_v27 = vshll.u32 %v1955_v0, %v1155_v57  ;;  %v2265_v28 = vadd.s32 %v2219_v39, %v2224_v44 }
 0x132   :  { %v1166_v30 = vor.u32 %v1165_v14, %v1164_v20  ;;  %v1171_v32 = vshrl.u32 %v1957_v11, %v1156_v5  ;;  %v1160_v38 = vor.u32 %v1159_v51, %v1158_v25  ;;  %v1163_v41 = vor.u32 %v1162_v49, %v1161_v26 }
 0x133   :  { %v1003_v23 = vclz %v1675_v16  ;;  %v895_v29 = vshll.u32 %v894_v55, 30  ;;  %v1169_v42 = vor.u32 %v1168_v22, %v1167_v27  ;;  %v1157_v48 = vshrl.u32 %v1952_v56, %v1156_v5 }
 0x134   :  { %v1170_v61 = vshll.u32 %v1956_v3, %v1155_v57  ;;  %vm1173_vm15 = vcmp.lt.s32.totalorder %v2248_v53, 1  ;;  %v918_v39 = vsub.s32 4, %v894_v55  ;;  %vm1174_vm3 = vcmp.lt.s32.totalorder %v2248_v53, 2 }
 0x135   :  { %v1676_v35 = vadd.s32 4294967294, %v1003_v23  ;;  %v2268_v59 = vsub.s32 %v892_v6, %v895_v29  ;;  %vm1176_vm4 = vcmp.lt.s32.totalorder %v2248_v53, 4  ;;  %v1181_v52 = vsel %vm1173_vm15, %v1160_v38, %v1163_v41 }
 0x136   :  { %v1172_v1 = vor.u32 %v1171_v32, %v1170_v61  ;;  %v1178_v4 = vsel %vm1176_vm4, %v1166_v30, 2102212464  ;;  %v1182_v6 = vsel %vm1176_vm4, %v1169_v42, 920167782  ;;  %vm1175_vm5 = vcmp.lt.s32.totalorder %v2248_v53, 3 }
 0x137   :  { %vm1677_vm1 = vcmp.lt.s32.totalorder %v1676_v35, 0  ;;  %v898_v63 = vsub.s32 0, %v2268_v59  ;;  %v1177_v54 = vsel %vm1173_vm15, %v1157_v48, %v1160_v38  ;;  %v1183_v51 = vsel %vm1175_vm5, %v1166_v30, %v1182_v6 }
 0x138   :  { %v1006_v44 = vsel %vm1677_vm1, 0, %v1676_v35  ;;  %v1185_v49 = vsel %vm1173_vm15, %v1163_v41, %v1166_v30  ;;  %vm2293_vm6 = vcmp.le.f32.partialorder %v935_v19, 0.7853982  ;;  %v1179_v22 = vsel %vm1175_vm5, %v1163_v41, %v1178_v4 }
 0x139   :  { %v1007_v57 = vsub.s32 32, %v1006_v44  ;;  %v1011_v5 = vsub.s32 4294967266, %v1006_v44  ;;  %v1008_v8 = vshll.u32 %v2240_v47, %v1006_v44  ;;  %v1671_v10 = vmin.u32 %v898_v63, %v2268_v59 }
 0x13a   :  { %v1184_v23 = vsel %vm1174_vm3, %v1181_v52, %v1183_v51  ;;  %v1186_v25 = vsel %vm1176_vm4, %v1172_v1, 1326507024  ;;  %vm2303_vm7 = vcmp.le.f32.partialorder %v832_v21, 0.7853982  ;;  %v1678_v29 = vadd.s32 4294967169, %v1042_v58 }
 0x13b   :  { %v1009_v14 = vshrl.u32 %v991_v9, %v1007_v57  ;;  %v1012_v16 = vadd.s32 127, %v1011_v5  ;;  %v900_v47 = vclz %v1671_v10  ;;  %v1187_v19 = vsel %vm1175_vm5, %v1169_v42, %v1186_v25 }
 0x13c   :  { %v1188_v32 = vsel %vm1174_vm3, %v1185_v49, %v1187_v19  ;;  %v2310_v35 = vmul.u32.u64.low %v2246_v12, %v1184_v23  ;;  %v2311_v38 = vmul.u32.u64.high %v2246_v12, %v1184_v23, %v2310_v35  ;;  %v1180_v48 = vsel %vm1174_vm3, %v1177_v54, %v1179_v22 }
 0x13d   :  { %v1010_v9 = vor.u32 %v1009_v14, %v1008_v8  ;;  %v1013_v26 = vshll.u32 %v1012_v16, 23  ;;  %v1672_v30 = vadd.s32 4294967294, %v900_v47  ;;  %v1022_v58 = vsel %vm937_vm0, %v1021_v18, %v2230_v46 }
 0x13e   :  { %v2317_v21 = vmul.u32.u64.low %v2246_v12, %v1188_v32  ;;  %v2318_v61 = vmul.u32.u64.high %v2246_v12, %v1188_v32, %v2317_v21  ;;  %v919_v42 = vsel %vm834_vm2, %v918_v39, %v894_v55  ;;  %v1048_v44 = vadd.s32 1, %v1678_v29 }
 0x13f   :  { %v1014_v41 = vor.u32 4788187, %v1013_v26  ;;  %vm1673_vm8 = vcmp.lt.s32.totalorder %v1672_v30, 0  ;;  %v1017_v1 = vcvt.s32.f32 %v1010_v9  ;;  %v2327_v53 = vadd.f32 %v2132_v24, %v2148_v37 }
 0x140   :  { %v903_v4 = vsel %vm1673_vm8, 0, %v1672_v30  ;;  %v1196_v52 = vmul.u32 %v2246_v12, %v1180_v48  ;;  %v1199_v6 = vadd.s32 1, %v2311_v38  ;;  %vm1198_vm9 = vc.u32 %v2318_v61, %v2310_v35 }
 0x141   :  { %v1015_v63 = vand.u32 2147483647, %v1014_v41  ;;  %v904_v57 = vsub.s32 32, %v903_v4  ;;  %v908_v5 = vsub.s32 4294967266, %v903_v4  ;;  %v905_v46 = vshll.u32 %v2268_v59, %v903_v4 }
 0x142   :  { %vm1049_vm10 = vcmp.gt.s32.totalorder %v1048_v44, 0  ;;  %v1200_v39 = vsel %vm1198_vm9, %v1199_v6, %v2311_v38  ;;  %v1024_v10 = vsel %vm2293_vm6, 0, %v1022_v58  ;;  %v921_v59 = vsel %vm2303_vm7, 0, %v919_v42 }
 0x143   :  { %v1018_v8 = vmul.f32 %v1017_v1, %v1015_v63  ;;  %v906_v18 = vshrl.u32 %v2265_v28, %v904_v57  ;;  %v909_v55 = vadd.s32 127, %v908_v5  ;;  %v1050_v24 = vsel %vm1049_vm10, %v1048_v44, 0 }
 0x144   :  { %v1201_v12 = vadd.s32 %v1200_v39, %v1196_v52  ;;  %v1052_v54 = vand.u32 31, %v1050_v24  ;;  %v2345_v22 = vand.u32 3, %v1024_v10  ;;  %v2347_v25 = vand.u32 3, %v921_v59 }
 0x145   :  { %v1019_v37 = vxor.u32 2147483648, %v1018_v8  ;;  %v907_v14 = vor.u32 %v906_v18, %v905_v46  ;;  %v910_v16 = vshll.u32 %v909_v55, 23  ;;  %v1046_v26 = vor.u32 8388608, %v2253_v15 }
 0x146   :  { %v1202_v49 = vadd.s32 536870912, %v1201_v12  ;;  %v1053_v28 = vsub.s32 32, %v1052_v54  ;;  %v814_v30 = vmul.f32 %v2144_v34, %v2113_v2  ;;  %v2355_v20 = vshrl.u32 %v1050_v24, 5 }
 0x147   :  { %v1020_v51 = vsel %vm937_vm0, %v1019_v37, %v1018_v8  ;;  %v911_v23 = vor.u32 4788187, %v910_v16  ;;  %v914_v29 = vcvt.s32.f32 %v907_v14  ;;  %v2360_v41 = vmul.f32 %v2146_v36, %v2113_v2 }
 0x148   :  { %v1023_v47 = vsel %vm2293_vm6, %v2123_v13, %v1020_v51  ;;  %v2349_v9 = vshrl.u32 %v1202_v49, 30  ;;  %v1062_v38 = vshrl.u32 %v1955_v0, %v1053_v28  ;;  %v1056_v21 = vshrl.u32 %v1953_v60, %v1053_v28 }
 0x149   :  { %1918 = vcosq.f32 %v1023_v47  ;;  %v912_v19 = vand.u32 2147483647, %v911_v23  ;;  %v1059_v15 = vshrl.u32 %v1954_v62, %v1053_v28  ;;  %v1065_v58 = vshrl.u32 %v1956_v3, %v1053_v28 }
 0x14a   :  { %1920 = vsinq.f32 %v1023_v47  ;;  %v1204_v32 = vshll.u32 %v2349_v9, 30  ;;  %vm1033_vm11 = vcmp.eq.s32.totalorder %v2345_v22, 2  ;;  %v1055_v42 = vshll.u32 %v1952_v56, %v1052_v54 }
 0x14b   :  { %v915_v48 = vmul.f32 %v914_v29, %v912_v19  ;;  %v1061_v44 = vshll.u32 %v1954_v62, %v1052_v54  ;;  %v2370_v63 = vshll.u32 %v1046_v26, 8  ;;  %vm1030_vm12 = vcmp.eq.s32.totalorder %v2345_v22, 0 }
 0x14c   :  { %v2366_v34 = vsub.s32 %v1201_v12, %v1204_v32  ;;  %v1058_v1 = vshll.u32 %v1953_v60, %v1052_v54  ;;  %v1064_v4 = vshll.u32 %v1955_v0, %v1052_v54  ;;  %v1068_v57 = vshrl.u32 %v1957_v11, %v1053_v28 }
 0x14d   :  { %v916_v36 = vxor.u32 2147483648, %v915_v48  ;;  %vm1029_vm13 = vcmp.lt.s32.totalorder %v2345_v22, 2  ;;  %v1063_v52 = vor.u32 %v1062_v38, %v1061_v44  ;;  %v1067_v6 = vshll.u32 %v1956_v3, %v1052_v54 }
 0x14e   :  { %v1207_v5 = vsub.s32 0, %v2366_v34  ;;  %v2380_v8 = vadd.f32 %v2118_v7, %v814_v30  ;;  %vm1027_vm14 = vweird.f32 %v2123_v13  ;;  %v1057_v18 = vor.u32 %v1056_v21, %v1055_v42 }
 0x14f   :  { %v917_v46 = vsel %vm834_vm2, %v916_v36, %v915_v48  ;;  %v1060_v55 = vor.u32 %v1059_v15, %v1058_v1  ;;  %v1066_v39 = vor.u32 %v1065_v58, %v1064_v4  ;;  %v1054_v10 = vshrl.u32 %v1952_v56, %v1053_v28 }
 0x150   :  { %v920_v24 = vsel %vm2303_vm7, %v2126_v17, %v917_v46  ;;  %v1683_v37 = vmin.u32 %v1207_v5, %v2366_v34  ;;  %v1069_v12 = vor.u32 %v1068_v57, %v1067_v6  ;;  %vm1070_vm15 = vcmp.lt.s32.totalorder %v2355_v20, 1 }
 0x151   :  { %1922 = vcosq.f32 %v920_v24  ;;  %vm1071_vm0 = vcmp.lt.s32.totalorder %v2355_v20, 2  ;;  %vm1073_vm1 = vcmp.lt.s32.totalorder %v2355_v20, 4  ;;  %vm1072_vm2 = vcmp.lt.s32.totalorder %v2355_v20, 3 }
 0x152   :  { %1924 = vsinq.f32 %v920_v24  ;;  %v1209_v14 = vclz %v1683_v37  ;;  %v1075_v16 = vsel %vm1073_vm1, %v1063_v52, 2102212464  ;;  %v1078_v51 = vsel %vm1070_vm15, %v1057_v18, %v1060_v55 }
 0x153   :  { %v1919_v54 = vpop.eup %1918  ;;  %v1079_v49 = vsel %vm1073_vm1, %v1066_v39, 920167782  ;;  %v1082_v28 = vsel %vm1070_vm15, %v1060_v55, %v1063_v52  ;;  %vm1143_vm3 = vcmp.lt.s32.totalorder %v2142_v33, 0  ;;  %v1083_v19 = vsel %vm1073_vm1, %v1069_v12, 1326507024 }
 0x154   :  { %v1921_v27 = vpop.eup %1920  ;;  %v1034_v59 = vxor.u32 2147483648, %v1919_v54  ;;  %v1684_v23 = vadd.s32 4294967294, %v1209_v14  ;;  %v1080_v26 = vsel %vm1072_vm2, %v1063_v52, %v1079_v49  ;;  %v1074_v30 = vsel %vm1070_vm15, %v1054_v10, %v1057_v18 }
 0x155   :  { %v1031_v47 = vxor.u32 2147483648, %v1921_v27  ;;  %v1076_v32 = vsel %vm1072_vm2, %v1060_v55, %v1075_v16  ;;  %v1084_v38 = vsel %vm1072_vm2, %v1066_v39, %v1083_v19  ;;  %vm927_vm4 = vcmp.eq.s32.totalorder %v2347_v25, 0 }
 0x156   :  { %v1035_v29 = vsel %vm1033_vm11, %v1034_v59, %v1921_v27  ;;  %vm1685_vm5 = vcmp.lt.s32.totalorder %v1684_v23, 0  ;;  %v1081_v21 = vsel %vm1071_vm0, %v1078_v51, %v1080_v26  ;;  %v1085_v15 = vsel %vm1071_vm0, %v1082_v28, %v1084_v38 }
 0x157   :  { %v1032_v48 = vsel %vm1030_vm12, %v1919_v54, %v1031_v47  ;;  %vm926_vm6 = vcmp.lt.s32.totalorder %v2347_v25, 2  ;;  %v1212_v42 = vsel %vm1685_vm5, 0, %v1684_v23  ;;  %vm924_vm7 = vweird.f32 %v2126_v17 }
 0x158   :  { %v1036_v58 = vsel %vm1029_vm13, %v1032_v48, %v1035_v29  ;;  %v2414_v44 = vmul.u32.u64.low %v2370_v63, %v1085_v15  ;;  %v2415_v36 = vmul.u32.u64.high %v2370_v63, %v1085_v15, %v2414_v44  ;;  %vm2422_vm8 = vcmp.le.f32.partialorder %v1141_v43, 0.7853982 }
 0x159   :  { %v1037_v1 = vsel %vm1027_vm14, nan, %v1036_v58  ;;  %v1197_v22 = vadd.s32 %v2310_v35, %v2318_v61  ;;  %v1213_v57 = vsub.s32 32, %v1212_v42  ;;  %v1217_v5 = vsub.s32 4294967266, %v1212_v42 }
 0x15a   :  { %1657 = vst [vmem:[%s2823_s4 + $0x8] sm:$0xff] %v1037_v1  ;;  %v1227_v13 = vsub.s32 4, %v2349_v9  ;;  %v1077_v52 = vsel %vm1071_vm0, %v1074_v30, %v1076_v32  ;;  %v2435_v6 = vmul.u32.u64.low %v2370_v63, %v1081_v21  ;;  %v2436_v43 = vmul.u32.u64.high %v2370_v63, %v1081_v21, %v2435_v6 }
 0x15b   :  { %v1214_v46 = vshll.u32 %v2366_v34, %v1212_v42  ;;  %v1215_v18 = vshrl.u32 %v1197_v22, %v1213_v57  ;;  %v1218_v55 = vadd.s32 127, %v1217_v5  ;;  %v1350_v35 = vand.u32 2139095040, %v2380_v8  ;;  %v1923_v61 = vpop.eup %1922 }
 0x15c   :  { %vm930_vm9 = vcmp.eq.s32.totalorder %v2347_v25, 2  ;;  %vm1095_vm10 = vc.u32 %v2415_v36, %v2435_v6  ;;  %v1347_v39 = vand.u32 2147483647, %v2380_v8  ;;  %v2445_v20 = vadd.f32 %v2118_v7, %v2360_v41  ;;  %v1925_v24 = vpop.eup %1924 }
 0x15d   :  { %v931_v37 = vxor.u32 2147483648, %v1923_v61  ;;  %v1216_v10 = vor.u32 %v1215_v18, %v1214_v46  ;;  %v1219_v12 = vshll.u32 %v1218_v55, 23  ;;  %v1351_v34 = vshrl.u32 %v1350_v35, 23 }
 0x15e   :  { %v928_v54 = vxor.u32 2147483648, %v1925_v24  ;;  %v1228_v14 = vsel %vm1143_vm3, %v1227_v13, %v2349_v9  ;;  %v1093_v16 = vmul.u32 %v2370_v63, %v1077_v52  ;;  %v1096_v27 = vadd.s32 1, %v2436_v43 }
 0x15f   :  { %v932_v59 = vsel %vm930_vm9, %v931_v37, %v1925_v24  ;;  %v1220_v51 = vor.u32 4788187, %v1219_v12  ;;  %v1690_v49 = vadd.s32 4294967169, %v1351_v34  ;;  %v1244_v41 = vand.u32 2147483647, %v2445_v20 }
 0x160   :  { %v929_v28 = vsel %vm927_vm4, %v1923_v61, %v928_v54  ;;  %v1223_v47 = vcvt.s32.f32 %v1216_v10  ;;  %v1097_v23 = vsel %vm1095_vm10, %v1096_v27, %v2436_v43  ;;  %v1354_v9 = vand.u32 8388607, %v1347_v39 }
 0x161   :  { %v933_v63 = vsel %vm926_vm6, %v929_v28, %v932_v59  ;;  %v1221_v26 = vand.u32 2147483647, %v1220_v51  ;;  %v1098_v19 = vadd.s32 %v1097_v23, %v1093_v16  ;;  %v1357_v29 = vadd.s32 1, %v1690_v49 }
 0x162   :  { %v934_v30 = vsel %vm924_vm7, nan, %v933_v63  ;;  %v1230_v32 = vsel %vm2422_vm8, 0, %v1228_v14  ;;  %v1247_v38 = vand.u32 2139095040, %v2445_v20  ;;  %v1251_v25 = vand.u32 8388607, %v1244_v41 }
 0x163   :  { %1656 = vst [vmem:[%s2823_s4] sm:$0xff] %v934_v30  ;;  %v1224_v48 = vmul.f32 %v1223_v47, %v1221_v26  ;;  %v1099_v21 = vadd.s32 536870912, %v1098_v19  ;;  %vm1358_vm11 = vcmp.gt.s32.totalorder %v1357_v29, 0  ;;  %v1355_v15 = vor.u32 8388608, %v1354_v9 }
 0x164   :  { %v1359_v58 = vsel %vm1358_vm11, %v1357_v29, 0  ;;  %v1248_v1 = vshrl.u32 %v1247_v38, 23  ;;  %v2474_v22 = vand.u32 3, %v1230_v32  ;;  %v2478_v57 = vadd.f32 %v2139_v31, %v2150_v40 }
 0x165   :  { %v1225_v42 = vxor.u32 2147483648, %v1224_v48  ;;  %v2472_v17 = vshrl.u32 %v1099_v21, 30  ;;  %v1361_v44 = vand.u32 31, %v1359_v58  ;;  %v1252_v43 = vor.u32 8388608, %v1251_v25 }
 0x166   :  { %v2487_v18 = vadd.s32 %v2435_v6, %v2415_v36  ;;  %v2489_v55 = vshll.u32 %v1355_v15, 8  ;;  %v816_v31 = vmul.f32 %v2327_v53, %v2113_v2  ;;  %v1360_v35 = vshrl.u32 %v1359_v58, 5 }
 0x167   :  { %v1226_v5 = vsel %vm1143_vm3, %v1225_v42, %v1224_v48  ;;  %v1101_v13 = vshll.u32 %v2472_v17, 30  ;;  %v1362_v52 = vsub.s32 32, %v1361_v44  ;;  %v1686_v61 = vadd.s32 4294967169, %v1248_v1 }
 0x168   :  { %v1229_v46 = vsel %vm2422_vm8, %v2142_v33, %v1226_v5  ;;  %v1364_v24 = vshll.u32 %v1952_v56, %v1361_v44  ;;  %v1367_v6 = vshll.u32 %v1953_v60, %v1361_v44  ;;  %v2501_v12 = vshll.u32 %v1252_v43, 8 }
 0x169   :  { %1926 = vcosq.f32 %v1229_v46  ;;  %v2493_v40 = vsub.s32 %v1098_v19, %v1101_v13  ;;  %v1365_v37 = vshrl.u32 %v1953_v60, %v1362_v52  ;;  %v1368_v4 = vshrl.u32 %v1954_v62, %v1362_v52 }
 0x16a   :  { %1928 = vsinq.f32 %v1229_v46  ;;  %v1371_v10 = vshrl.u32 %v1955_v0, %v1362_v52  ;;  %v1370_v53 = vshll.u32 %v1954_v62, %v1361_v44  ;;  %v1373_v34 = vshll.u32 %v1955_v0, %v1361_v44 }
 0x16b   :  { %v1104_v36 = vsub.s32 0, %v2493_v40  ;;  %v1366_v2 = vor.u32 %v1365_v37, %v1364_v24  ;;  %v1374_v54 = vshrl.u32 %v1956_v3, %v1362_v52  ;;  %vm1239_vm12 = vcmp.eq.s32.totalorder %v2474_v22, 2 }
 0x16c   :  { %v1363_v16 = vshrl.u32 %v1952_v56, %v1362_v52  ;;  %v1369_v27 = vor.u32 %v1368_v4, %v1367_v6  ;;  %v2510_v59 = vadd.f32 %v2118_v7, %v816_v31  ;;  %vm1236_vm13 = vcmp.eq.s32.totalorder %v2474_v22, 0 }
 0x16d   :  { %v1679_v14 = vmin.u32 %v1104_v36, %v2493_v40  ;;  %v1372_v51 = vor.u32 %v1371_v10, %v1370_v53  ;;  %v1375_v49 = vor.u32 %v1374_v54, %v1373_v34  ;;  %v1376_v28 = vshll.u32 %v1956_v3, %v1361_v44 }
 0x16e   :  { %v1377_v47 = vshrl.u32 %v1957_v11, %v1362_v52  ;;  %vm1235_vm14 = vcmp.lt.s32.totalorder %v2474_v22, 2  ;;  %vm1379_vm15 = vcmp.lt.s32.totalorder %v1360_v35, 1  ;;  %vm1380_vm0 = vcmp.lt.s32.totalorder %v1360_v35, 2 }
 0x16f   :  { %v1106_v23 = vclz %v1679_v14  ;;  %vm1382_vm1 = vcmp.lt.s32.totalorder %v1360_v35, 4  ;;  %vm1233_vm2 = vweird.f32 %v2142_v33  ;;  %vm1040_vm3 = vcmp.lt.s32.totalorder %v2228_v45, 0 }
 0x170   :  { %v1378_v7 = vor.u32 %v1377_v47, %v1376_v28  ;;  %vm1381_vm4 = vcmp.lt.s32.totalorder %v1360_v35, 3  ;;  %v1383_v9 = vsel %vm1379_vm15, %v1363_v16, %v1366_v2  ;;  %v1384_v63 = vsel %vm1382_vm1, %v1372_v51, 2102212464 }
 0x171   :  { %v1680_v26 = vadd.s32 4294967294, %v1106_v23  ;;  %v1385_v19 = vsel %vm1381_vm4, %v1369_v27, %v1384_v63  ;;  %v1388_v29 = vsel %vm1382_vm1, %v1375_v49, 920167782  ;;  %v1391_v30 = vsel %vm1379_vm15, %v1369_v27, %v1372_v51 }
 0x172   :  { %v1387_v32 = vsel %vm1379_vm15, %v1366_v2, %v1369_v27  ;;  %v1389_v38 = vsel %vm1381_vm4, %v1372_v51, %v1388_v29  ;;  %v1392_v48 = vsel %vm1382_vm1, %v1378_v7, 1326507024  ;;  %v1254_v21 = vadd.s32 1, %v1686_v61 }
 0x173   :  { %v1927_v25 = vpop.eup %1926  ;;  %vm1681_vm5 = vcmp.lt.s32.totalorder %v1680_v26, 0  ;;  %v1124_v15 = vsub.s32 4, %v2472_v17  ;;  %v1386_v58 = vsel %vm1380_vm0, %v1383_v9, %v1385_v19  ;;  %v1393_v42 = vsel %vm1381_vm4, %v1375_v49, %v1392_v48 }
 0x174   :  { %v1929_v44 = vpop.eup %1928  ;;  %v1240_v1 = vxor.u32 2147483648, %v1927_v25  ;;  %v1109_v5 = vsel %vm1681_vm5, 0, %v1680_v26  ;;  %v1394_v13 = vsel %vm1380_vm0, %v1391_v30, %v1393_v42  ;;  %vm1255_vm6 = vcmp.gt.s32.totalorder %v1254_v21, 0 }
 0x175   :  { %v1237_v52 = vxor.u32 2147483648, %v1929_v44  ;;  %v1110_v43 = vsub.s32 32, %v1109_v5  ;;  %v1114_v46 = vsub.s32 4294967266, %v1109_v5  ;;  %v1390_v31 = vsel %vm1380_vm0, %v1387_v32, %v1389_v38 }
 0x176   :  { %v1241_v61 = vsel %vm1239_vm12, %v1240_v1, %v1929_v44  ;;  %v2525_v24 = vmul.u32.u64.low %v2489_v55, %v1394_v13  ;;  %v2526_v37 = vmul.u32.u64.high %v2489_v55, %v1394_v13, %v2525_v24  ;;  %v1256_v4 = vsel %vm1255_vm6, %v1254_v21, 0 }
 0x177   :  { %v1238_v36 = vsel %vm1236_vm13, %v1927_v25, %v1237_v52  ;;  %v1111_v6 = vshll.u32 %v2493_v40, %v1109_v5  ;;  %v1112_v10 = vshrl.u32 %v2487_v18, %v1110_v43  ;;  %v1115_v2 = vadd.s32 127, %v1114_v46 }
 0x178   :  { %v1242_v35 = vsel %vm1235_vm14, %v1238_v36, %v1241_v61  ;;  %v2535_v53 = vmul.u32.u64.low %v2489_v55, %v1390_v31  ;;  %v2536_v34 = vmul.u32.u64.high %v2489_v55, %v1390_v31, %v2535_v53  ;;  %v1258_v54 = vand.u32 31, %v1256_v4 }
 0x179   :  { %v1243_v14 = vsel %vm1233_vm2, nan, %v1242_v35  ;;  %v1113_v16 = vor.u32 %v1112_v10, %v1111_v6  ;;  %v1116_v27 = vshll.u32 %v1115_v2, 23  ;;  %v2544_v40 = vsel %vm1040_vm3, %v1124_v15, %v2472_v17 }
 0x17a   :  { %1659 = vst [vmem:[%s2823_s4 + $0x18] sm:$0xff] %v1243_v14  ;;  %v1402_v22 = vmul.u32 %v2489_v55, %v1386_v58  ;;  %vm1404_vm7 = vc.u32 %v2526_v37, %v2535_v53  ;;  %v1257_v18 = vshrl.u32 %v1256_v4, 5  ;;  %v1259_v51 = vsub.s32 32, %v1258_v54 }
 0x17b   :  { %vm2554_vm8 = vcmp.le.f32.partialorder %v1038_v50, 0.7853982  ;;  %v1117_v49 = vor.u32 4788187, %v1116_v27  ;;  %v1120_v17 = vcvt.s32.f32 %v1113_v16  ;;  %v1261_v28 = vshll.u32 %v1952_v56, %v1258_v54 }
 0x17c   :  { %v1264_v47 = vshll.u32 %v1953_v60, %v1258_v54  ;;  %v1405_v23 = vadd.s32 1, %v2536_v34  ;;  %v1262_v55 = vshrl.u32 %v1953_v60, %v1259_v51  ;;  %v1265_v7 = vshrl.u32 %v1954_v62, %v1259_v51 }
 0x17d   :  { %v1267_v9 = vshll.u32 %v1954_v62, %v1258_v54  ;;  %v1118_v63 = vand.u32 2147483647, %v1117_v49  ;;  %v1268_v50 = vshrl.u32 %v1955_v0, %v1259_v51  ;;  %v1270_v26 = vshll.u32 %v1955_v0, %v1258_v54 }
 0x17e   :  { %v1271_v19 = vshrl.u32 %v1956_v3, %v1259_v51  ;;  %v1406_v29 = vsel %vm1404_vm7, %v1405_v23, %v2536_v34  ;;  %v1263_v30 = vor.u32 %v1262_v55, %v1261_v28  ;;  %v1266_v32 = vor.u32 %v1265_v7, %v1264_v47  ;;  %v1950_v7 = vld [vmem:[%s2821_s2] ss:$0 sm:$0xff] }
 0x17f   :  { %vm1276_vm9 = vcmp.lt.s32.totalorder %v1257_v18, 1  ;;  %v1121_v38 = vmul.f32 %v1120_v17, %v1118_v63  ;;  %v1407_v48 = vadd.s32 %v1406_v29, %v1402_v22  ;;  %v1269_v21 = vor.u32 %v1268_v50, %v1267_v9  ;;  %v1951_v29 = vld [vmem:[%s2822_s3] ss:$0 sm:$0xff] }
 0x180   :  { %v1272_v25 = vor.u32 %v1271_v19, %v1270_v26  ;;  %v1260_v15 = vshrl.u32 %v1952_v56, %v1259_v51  ;;  %v1273_v58 = vshll.u32 %v1956_v3, %v1258_v54  ;;  %v1274_v42 = vshrl.u32 %v1957_v11, %v1259_v51 }
 0x181   :  { %vm1277_vm10 = vcmp.lt.s32.totalorder %v1257_v18, 2  ;;  %v1122_v44 = vxor.u32 2147483648, %v1121_v38  ;;  %v1408_v1 = vadd.s32 536870912, %v1407_v48  ;;  %vm1278_vm11 = vcmp.lt.s32.totalorder %v1257_v18, 3 }
 0x182   :  { %vm1279_vm12 = vcmp.lt.s32.totalorder %v1257_v18, 4  ;;  %v1275_v5 = vor.u32 %v1274_v42, %v1273_v58  ;;  %v1284_v52 = vsel %vm1276_vm9, %v1263_v30, %v1266_v32  ;;  %v1280_v61 = vsel %vm1276_vm9, %v1260_v15, %v1263_v30 }
 0x183   :  { %v1281_v13 = vsel %vm1279_vm12, %v1269_v21, 2102212464  ;;  %v1285_v43 = vsel %vm1279_vm12, %v1272_v25, 920167782  ;;  %v1123_v46 = vsel %vm1040_vm3, %v1122_v44, %v1121_v38  ;;  %v1409_v31 = vshrl.u32 %v1408_v1, 30 }
 0x184   :  { %v1286_v24 = vsel %vm1278_vm11, %v1269_v21, %v1285_v43  ;;  %v1126_v4 = vsel %vm2554_vm8, %v2228_v45, %v1123_v46  ;;  %v1288_v6 = vsel %vm1276_vm9, %v1266_v32, %v1269_v21  ;;  %v1289_v10 = vsel %vm1279_vm12, %v1275_v5, 1326507024 }
 0x185   :  { %v1287_v36 = vsel %vm1277_vm10, %v1284_v52, %v1286_v24  ;;  %1930 = vcosq.f32 %v1126_v4  ;;  %v1410_v2 = vshll.u32 %v1409_v31, 30  ;;  %v1282_v35 = vsel %vm1278_vm11, %v1266_v32, %v1281_v13 }
 0x186   :  { %v1290_v34 = vsel %vm1278_vm11, %v1272_v25, %v1289_v10  ;;  %1932 = vsinq.f32 %v1126_v4  ;;  %v2588_v14 = vmul.u32.u64.low %v2501_v12, %v1287_v36  ;;  %v2589_v16 = vmul.u32.u64.high %v2501_v12, %v1287_v36, %v2588_v14 }
 0x187   :  { %v1291_v54 = vsel %vm1277_vm10, %v1288_v6, %v1290_v34  ;;  %v1127_v27 = vsel %vm2554_vm8, 0, %v2544_v40  ;;  %v1411_v22 = vsub.s32 %v1407_v48, %v1410_v2  ;;  %v1283_v28 = vsel %vm1277_vm10, %v1280_v61, %v1282_v35 }
 0x188   :  { %v2596_v51 = vmul.u32.u64.low %v2501_v12, %v1291_v54  ;;  %v2597_v49 = vmul.u32.u64.high %v2501_v12, %v1291_v54, %v2596_v51  ;;  %v1556_v47 = vand.u32 2139095040, %v2510_v59  ;;  %v1131_v23 = vand.u32 3, %v1127_v27 }
 0x189   :  { %v1413_v17 = vsub.s32 0, %v1411_v22  ;;  %v1302_v55 = vadd.s32 1, %v2589_v16  ;;  %v815_v33 = vmul.f32 %v1950_v7, %v2478_v57  ;;  %v1433_v9 = vsub.s32 4, %v1409_v31 }
 0x18a   :  { %vm1130_vm13 = vweird.f32 %v2228_v45  ;;  %v1299_v63 = vmul.u32 %v2501_v12, %v1283_v28  ;;  %vm1301_vm14 = vc.u32 %v2597_v49, %v2588_v14  ;;  %v1553_v18 = vand.u32 2147483647, %v2510_v59 }
 0x18b   :  { %v1691_v40 = vmin.u32 %v1413_v17, %v1411_v22  ;;  %v1557_v50 = vshrl.u32 %v1556_v47, 23  ;;  %vm2613_vm15 = vcmp.le.f32.partialorder %v1347_v39, 0.7853982  ;;  %v1303_v57 = vsel %vm1301_vm14, %v1302_v55, %v2589_v16 }
 0x18c   :  { %v2621_v12 = vadd.f32 %v1951_v29, %v815_v33  ;;  %vm1132_vm0 = vcmp.lt.s32.totalorder %v1131_v23, 2  ;;  %vm1349_vm1 = vcmp.lt.s32.totalorder %v2380_v8, 0  ;;  %v1304_v30 = vadd.s32 %v1303_v57, %v1299_v63 }
 0x18d   :  { %v1415_v19 = vclz %v1691_v40  ;;  %v1698_v32 = vadd.s32 4294967169, %v1557_v50  ;;  %vm1133_vm2 = vcmp.eq.s32.totalorder %v1131_v23, 0  ;;  %vm1136_vm3 = vcmp.eq.s32.totalorder %v1131_v23, 2 }
 0x18e   :  { %v1434_v48 = vsel %vm1349_vm1, %v1433_v9, %v1409_v31  ;;  %v1305_v15 = vadd.s32 536870912, %v1304_v30  ;;  %v1560_v58 = vand.u32 8388607, %v1553_v18  ;;  %v1403_v1 = vadd.s32 %v2535_v53, %v2526_v37 }
 0x18f   :  { %v1931_v38 = vpop.eup %1930  ;;  %v1692_v39 = vadd.s32 4294967294, %v1415_v19  ;;  %v1563_v42 = vadd.s32 1, %v1698_v32  ;;  %v1453_v5 = vand.u32 2139095040, %v2621_v12  ;;  %v1436_v24 = vsel %vm2613_vm15, 0, %v1434_v48 }
 0x190   :  { %v1933_v21 = vpop.eup %1932  ;;  %v1137_v25 = vxor.u32 2147483648, %v1931_v38  ;;  %v2631_v43 = vshrl.u32 %v1305_v15, 30  ;;  %v1561_v37 = vor.u32 8388608, %v1560_v58  ;;  %v2643_v17 = vand.u32 3, %v1436_v24 }
 0x191   :  { %v1134_v44 = vxor.u32 2147483648, %v1933_v21  ;;  %vm1693_vm4 = vcmp.lt.s32.totalorder %v1692_v39, 0  ;;  %vm1564_vm5 = vcmp.gt.s32.totalorder %v1563_v42, 0  ;;  %v1454_v16 = vshrl.u32 %v1453_v5, 23 }
 0x192   :  { %v1138_v13 = vsel %vm1136_vm3, %v1137_v25, %v1933_v21  ;;  %v1418_v52 = vsel %vm1693_vm4, 0, %v1692_v39  ;;  %v1307_v36 = vshll.u32 %v2631_v43, 30  ;;  %v1565_v53 = vsel %vm1564_vm5, %v1563_v42, 0 }
 0x193   :  { %v1135_v46 = vsel %vm1133_vm2, %v1931_v38, %v1134_v44  ;;  %v1419_v31 = vsub.s32 32, %v1418_v52  ;;  %v1423_v61 = vsub.s32 4294967266, %v1418_v52  ;;  %v1420_v10 = vshll.u32 %v1411_v22, %v1418_v52 }
 0x194   :  { %v1139_v4 = vsel %vm1132_vm0, %v1135_v46, %v1138_v13  ;;  %v1308_v34 = vsub.s32 %v1304_v30, %v1307_v36  ;;  %v1567_v54 = vand.u32 31, %v1565_v53  ;;  %v1300_v45 = vadd.s32 %v2588_v14, %v2597_v49 }
 0x195   :  { %v1140_v6 = vsel %vm1130_vm13, nan, %v1139_v4  ;;  %v1421_v2 = vshrl.u32 %v1403_v1, %v1419_v31  ;;  %v1424_v35 = vadd.s32 127, %v1423_v61  ;;  %v2647_v22 = vshrl.u32 %v1565_v53, 5 }
 0x196   :  { %1658 = vst [vmem:[%s2823_s4 + $0x10] sm:$0xff] %v1140_v6  ;;  %v1310_v28 = vsub.s32 0, %v1308_v34  ;;  %v1568_v47 = vsub.s32 32, %v1567_v54  ;;  %v2649_v55 = vshll.u32 %v1561_v37, 8  ;;  %v1570_v40 = vshll.u32 %v1952_v56, %v1567_v54 }
 0x197   :  { %v1422_v27 = vor.u32 %v1421_v2, %v1420_v10  ;;  %v1425_v51 = vshll.u32 %v1424_v35, 23  ;;  %v1694_v9 = vadd.s32 4294967169, %v1454_v16  ;;  %v1573_v19 = vshll.u32 %v1953_v60, %v1567_v54 }
 0x198   :  { %v1687_v33 = vmin.u32 %v1310_v28, %v1308_v34  ;;  %v1571_v50 = vshrl.u32 %v1953_v60, %v1568_v47  ;;  %v1574_v57 = vshrl.u32 %v1954_v62, %v1568_v47  ;;  %v1576_v30 = vshll.u32 %v1954_v62, %v1567_v54 }
 0x199   :  { %v1426_v23 = vor.u32 4788187, %v1425_v51  ;;  %v1429_v7 = vcvt.s32.f32 %v1422_v27  ;;  %v1577_v14 = vshrl.u32 %v1955_v0, %v1568_v47  ;;  %v1580_v49 = vshrl.u32 %v1956_v3, %v1568_v47 }
 0x19a   :  { %v1312_v29 = vclz %v1687_v33  ;;  %v1572_v38 = vor.u32 %v1571_v50, %v1570_v40  ;;  %v1579_v39 = vshll.u32 %v1955_v0, %v1567_v54  ;;  %vm1585_vm6 = vcmp.lt.s32.totalorder %v2647_v22, 1 }
 0x19b   :  { %v1427_v63 = vand.u32 2147483647, %v1426_v23  ;;  %v1575_v21 = vor.u32 %v1574_v57, %v1573_v19  ;;  %v1578_v25 = vor.u32 %v1577_v14, %v1576_v30  ;;  %v1583_v15 = vshrl.u32 %v1957_v11, %v1568_v47 }
 0x19c   :  { %v1688_v48 = vadd.s32 4294967294, %v1312_v29  ;;  %v1569_v42 = vshrl.u32 %v1952_v56, %v1568_v47  ;;  %v1581_v44 = vor.u32 %v1580_v49, %v1579_v39  ;;  %v1582_v1 = vshll.u32 %v1956_v3, %v1567_v54 }
 0x19d   :  { %v1430_v32 = vmul.f32 %v1429_v7, %v1427_v63  ;;  %vm1586_vm8 = vcmp.lt.s32.totalorder %v2647_v22, 2  ;;  %vm1587_vm9 = vcmp.lt.s32.totalorder %v2647_v22, 3  ;;  %vm1588_vm10 = vcmp.lt.s32.totalorder %v2647_v22, 4 }
 0x19e   :  { %vm1689_vm7 = vcmp.lt.s32.totalorder %v1688_v48, 0  ;;  %v1584_v52 = vor.u32 %v1583_v15, %v1582_v1  ;;  %v1590_v46 = vsel %vm1588_vm10, %v1578_v25, 2102212464  ;;  %v1593_v4 = vsel %vm1585_vm6, %v1572_v38, %v1575_v21 }
 0x19f   :  { %v1431_v58 = vxor.u32 2147483648, %v1430_v32  ;;  %v1315_v13 = vsel %vm1689_vm7, 0, %v1688_v48  ;;  %v1594_v37 = vsel %vm1588_vm10, %v1581_v44, 920167782  ;;  %v1597_v53 = vsel %vm1585_vm6, %v1575_v21, %v1578_v25 }
 0x1a0   :  { %v1316_v61 = vsub.s32 32, %v1315_v13  ;;  %v1320_v24 = vsub.s32 4294967266, %v1315_v13  ;;  %v1317_v36 = vshll.u32 %v1308_v34, %v1315_v13  ;;  %v1595_v26 = vsel %vm1587_vm9, %v1578_v25, %v1594_v37 }
 0x1a1   :  { %v1432_v5 = vsel %vm1349_vm1, %v1431_v58, %v1430_v32  ;;  %v1589_v2 = vsel %vm1585_vm6, %v1569_v42, %v1572_v38  ;;  %v1591_v35 = vsel %vm1587_vm9, %v1575_v21, %v1590_v46  ;;  %v1596_v34 = vsel %vm1586_vm8, %v1593_v4, %v1595_v26 }
 0x1a2   :  { %v1435_v31 = vsel %vm2613_vm15, %v2380_v8, %v1432_v5  ;;  %v1318_v6 = vshrl.u32 %v1300_v45, %v1316_v61  ;;  %v1321_v10 = vadd.s32 127, %v1320_v24  ;;  %v1598_v54 = vsel %vm1588_vm10, %v1584_v52, 1326507024 }
 0x1a3   :  { %1934 = vcosq.f32 %v1435_v31  ;;  %v1599_v51 = vsel %vm1587_vm9, %v1581_v44, %v1598_v54  ;;  %v1460_v28 = vadd.s32 1, %v1694_v9  ;;  %vm2700_vm11 = vcmp.le.f32.partialorder %v1244_v41, 0.7853982 }
 0x1a4   :  { %1936 = vsinq.f32 %v1435_v31  ;;  %v1319_v16 = vor.u32 %v1318_v6, %v1317_v36  ;;  %v1322_v27 = vshll.u32 %v1321_v10, 23  ;;  %v1600_v47 = vsel %vm1586_vm8, %v1597_v53, %v1599_v51 }
 0x1a5   :  { %v2694_v23 = vmul.u32.u64.low %v2649_v55, %v1596_v34  ;;  %v2695_v45 = vmul.u32.u64.high %v2649_v55, %v1596_v34, %v2694_v23  ;;  %v1330_v40 = vsub.s32 4, %v2631_v43  ;;  %vm1246_vm12 = vcmp.lt.s32.totalorder %v2445_v20, 0 }
 0x1a6   :  { %v1323_v33 = vor.u32 4788187, %v1322_v27  ;;  %v2706_v63 = vmul.u32.u64.low %v2649_v55, %v1600_v47  ;;  %v2707_v9 = vmul.u32.u64.high %v2649_v55, %v1600_v47, %v2706_v63  ;;  %v1592_v50 = vsel %vm1586_vm8, %v1589_v2, %v1591_v35 }
 0x1a7   :  { %v1450_v19 = vand.u32 2147483647, %v2621_v12  ;;  %vm1461_vm13 = vcmp.gt.s32.totalorder %v1460_v28, 0  ;;  %vm1439_vm14 = vweird.f32 %v2380_v8  ;;  %vm1441_vm15 = vcmp.lt.s32.totalorder %v2643_v17, 2 }
 0x1a8   :  { %v1324_v41 = vand.u32 2147483647, %v1323_v33  ;;  %v1326_v57 = vcvt.s32.f32 %v1319_v16  ;;  %v1462_v29 = vsel %vm1461_vm13, %v1460_v28, 0  ;;  %vm1442_vm0 = vcmp.eq.s32.totalorder %v2643_v17, 0 }
 0x1a9   :  { %vm1445_vm1 = vcmp.eq.s32.totalorder %v2643_v17, 2  ;;  %v1611_v30 = vadd.s32 1, %v2695_v45  ;;  %v1464_v14 = vand.u32 31, %v1462_v29  ;;  %v1331_v22 = vsel %vm1246_vm12, %v1330_v40, %v2631_v43 }
 0x1aa   :  { %v1327_v49 = vmul.f32 %v1326_v57, %v1324_v41  ;;  %v1608_v32 = vmul.u32 %v2649_v55, %v1592_v50  ;;  %vm1610_vm2 = vc.u32 %v2707_v9, %v2694_v23  ;;  %v1457_v48 = vand.u32 8388607, %v1450_v19 }
 0x1ab   :  { %v1612_v39 = vsel %vm1610_vm2, %v1611_v30, %v2695_v45  ;;  %v2727_v21 = vshrl.u32 %v1462_v29, 5  ;;  %v1465_v25 = vsub.s32 32, %v1464_v14  ;;  %v1467_v43 = vshll.u32 %v1952_v56, %v1464_v14 }
 0x1ac   :  { %v1328_v42 = vxor.u32 2147483648, %v1327_v49  ;;  %v1613_v44 = vadd.s32 %v1612_v39, %v1608_v32  ;;  %v1470_v5 = vshll.u32 %v1953_v60, %v1464_v14  ;;  %v1476_v26 = vshll.u32 %v1955_v0, %v1464_v14 }
 0x1ad   :  { %v1935_v38 = vpop.eup %1934  ;;  %v1468_v55 = vshrl.u32 %v1953_v60, %v1465_v25  ;;  %v1471_v13 = vshrl.u32 %v1954_v62, %v1465_v25  ;;  %v1474_v61 = vshrl.u32 %v1955_v0, %v1465_v25  ;;  %v1473_v60 = vshll.u32 %v1954_v62, %v1464_v14 }
 0x1ae   :  { %v1937_v15 = vpop.eup %1936  ;;  %v1446_v58 = vxor.u32 2147483648, %v1935_v38  ;;  %v1329_v46 = vsel %vm1246_vm12, %v1328_v42, %v1327_v49  ;;  %v1614_v31 = vadd.s32 536870912, %v1613_v44  ;;  %v1477_v2 = vshrl.u32 %v1956_v3, %v1465_v25 }
 0x1af   :  { %v1443_v1 = vxor.u32 2147483648, %v1937_v15  ;;  %v1332_v4 = vsel %vm2700_vm11, %v2445_v20, %v1329_v46  ;;  %v1469_v36 = vor.u32 %v1468_v55, %v1467_v43  ;;  %v1472_v6 = vor.u32 %v1471_v13, %v1470_v5 }
 0x1b0   :  { %v1447_v52 = vsel %vm1445_vm1, %v1446_v58, %v1937_v15  ;;  %1938 = vcosq.f32 %v1332_v4  ;;  %v2746_v53 = vshrl.u32 %v1614_v31, 30  ;;  %v1475_v17 = vor.u32 %v1474_v61, %v1473_v60 }
 0x1b1   :  { %v1444_v24 = vsel %vm1442_vm0, %v1935_v38, %v1443_v1  ;;  %1940 = vsinq.f32 %v1332_v4  ;;  %v1479_v35 = vshll.u32 %v1956_v3, %v1464_v14  ;;  %v1480_v34 = vshrl.u32 %v1957_v11, %v1465_v25 }
 0x1b2   :  { %v1448_v37 = vsel %vm1441_vm15, %v1444_v24, %v1447_v52  ;;  %v1616_v62 = vshll.u32 %v2746_v53, 30  ;;  %v1478_v54 = vor.u32 %v1477_v2, %v1476_v26  ;;  %v1458_v8 = vor.u32 8388608, %v1457_v48 }
 0x1b3   :  { %v1449_v10 = vsel %vm1439_vm14, nan, %v1448_v37  ;;  %v1481_v27 = vor.u32 %v1480_v34, %v1479_v35  ;;  %v1333_v0 = vsel %vm2700_vm11, 0, %v1331_v22  ;;  %vm1482_vm3 = vcmp.lt.s32.totalorder %v2727_v21, 1 }
 0x1b4   :  { %1661 = vst [vmem:[%s2823_s4 + $0x28] sm:$0xff] %v1449_v10  ;;  %v1617_v16 = vsub.s32 %v1613_v44, %v1616_v62  ;;  %vm1484_vm4 = vcmp.lt.s32.totalorder %v2727_v21, 3  ;;  %vm1485_vm5 = vcmp.lt.s32.totalorder %v2727_v21, 4  ;;  %v1490_v47 = vsel %vm1482_vm3, %v1469_v36, %v1472_v6 }
 0x1b5   :  { %v1487_v28 = vsel %vm1485_vm5, %v1475_v17, 2102212464  ;;  %v1491_v45 = vsel %vm1485_vm5, %v1478_v54, 920167782  ;;  %v1466_v3 = vshrl.u32 %v1952_v56, %v1465_v25  ;;  %v1494_v33 = vsel %vm1482_vm3, %v1472_v6, %v1475_v17 }
 0x1b6   :  { %v1619_v51 = vsub.s32 0, %v1617_v16  ;;  %v1492_v11 = vsel %vm1484_vm4, %v1475_v17, %v1491_v45  ;;  %v1495_v40 = vsel %vm1485_vm5, %v1481_v27, 1326507024  ;;  %v1337_v63 = vand.u32 3, %v1333_v0 }
 0x1b7   :  { %vm1483_vm6 = vcmp.lt.s32.totalorder %v2727_v21, 2  ;;  %v1498_v50 = vshll.u32 %v1458_v8, 8  ;;  %v1486_v41 = vsel %vm1482_vm3, %v1466_v3, %v1469_v36  ;;  %v1488_v57 = vsel %vm1484_vm4, %v1472_v6, %v1487_v28 }
 0x1b8   :  { %v1699_v7 = vmin.u32 %v1619_v51, %v1617_v16  ;;  %v1493_v29 = vsel %vm1483_vm6, %v1490_v47, %v1492_v11  ;;  %v1496_v56 = vsel %vm1484_vm4, %v1478_v54, %v1495_v40  ;;  %vm1342_vm7 = vcmp.eq.s32.totalorder %v1337_v63, 2 }
 0x1b9   :  { %v1497_v49 = vsel %vm1483_vm6, %v1494_v33, %v1496_v56  ;;  %v2775_v22 = vmul.u32.u64.low %v1498_v50, %v1493_v29  ;;  %v2776_v32 = vmul.u32.u64.high %v1498_v50, %v1493_v29, %v2775_v22  ;;  %vm1336_vm8 = vweird.f32 %v2445_v20 }
 0x1ba   :  { %v1939_v30 = vpop.eup %1938  ;;  %v1621_v14 = vclz %v1699_v7  ;;  %v2778_v48 = vmul.u32.u64.low %v1498_v50, %v1497_v49  ;;  %v2779_v25 = vmul.u32.u64.high %v1498_v50, %v1497_v49, %v2778_v48  ;;  %vm1339_vm9 = vcmp.eq.s32.totalorder %v1337_v63, 0 }
 0x1bb   :  { %v1941_v38 = vpop.eup %1940  ;;  %v1343_v39 = vxor.u32 2147483648, %v1939_v30  ;;  %v1489_v44 = vsel %vm1483_vm6, %v1486_v41, %v1488_v57  ;;  %vm1338_vm10 = vcmp.lt.s32.totalorder %v1337_v63, 2  ;;  %v1508_v1 = vadd.s32 1, %v2776_v32 }
 0x1bc   :  { %v1340_v15 = vxor.u32 2147483648, %v1941_v38  ;;  %v1700_v58 = vadd.s32 4294967294, %v1621_v14  ;;  %v1609_v5 = vadd.s32 %v2694_v23, %v2707_v9  ;;  %vm1507_vm12 = vc.u32 %v2779_v25, %v2775_v22 }
 0x1bd   :  { %v1344_v42 = vsel %vm1342_vm7, %v1343_v39, %v1941_v38  ;;  %v1505_v31 = vmul.u32 %v1498_v50, %v1489_v44  ;;  %v1509_v21 = vsel %vm1507_vm12, %v1508_v1, %v2776_v32  ;;  %vm1555_vm13 = vcmp.lt.s32.totalorder %v2510_v59, 0 }
 0x1be   :  { %v1341_v43 = vsel %vm1339_vm9, %v1939_v30, %v1340_v15  ;;  %vm1701_vm11 = vcmp.lt.s32.totalorder %v1700_v58, 0  ;;  %vm2795_vm14 = vcmp.le.f32.partialorder %v1553_v18, 0.7853982  ;;  %v1639_v8 = vsub.s32 4, %v2746_v53 }
 0x1bf   :  { %v1345_v55 = vsel %vm1338_vm10, %v1341_v43, %v1344_v42  ;;  %v1624_v13 = vsel %vm1701_vm11, 0, %v1700_v58  ;;  %v1510_v36 = vadd.s32 %v1509_v21, %v1505_v31  ;;  %v1506_v3 = vadd.s32 %v2775_v22, %v2779_v25 }
 0x1c0   :  { %v1346_v52 = vsel %vm1336_vm8, nan, %v1345_v55  ;;  %v1625_v46 = vsub.s32 32, %v1624_v13  ;;  %v1629_v20 = vsub.s32 4294967266, %v1624_v13  ;;  %v1626_v61 = vshll.u32 %v1617_v16, %v1624_v13 }
 0x1c1   :  { %1660 = vst [vmem:[%s2823_s4 + $0x20] sm:$0xff] %v1346_v52  ;;  %v1511_v23 = vadd.s32 536870912, %v1510_v36  ;;  %v1640_v28 = vsel %vm1555_vm13, %v1639_v8, %v2746_v53  ;;  %vm1645_vm3 = vweird.f32 %v2510_v59  ;;  %vm1452_vm4 = vcmp.lt.s32.totalorder %v2621_v12, 0 }
 0x1c2   :  { %v1627_v24 = vshrl.u32 %v1609_v5, %v1625_v46  ;;  %v1630_v4 = vadd.s32 127, %v1629_v20  ;;  %v1642_v18 = vsel %vm2795_vm14, 0, %v1640_v28  ;;  %vm1451_vm5 = vcmp.le.f32.partialorder %v1450_v19, 0.7853982 }
 0x1c3   :  { %v1512_v6 = vshrl.u32 %v1511_v23, 30  ;;  %v1646_v40 = vand.u32 3, %v1642_v18  ;;  %vm1542_vm9 = vweird.f32 %v2621_v12 }
 0x1c4   :  { %v1628_v60 = vor.u32 %v1627_v24, %v1626_v61  ;;  %v1631_v37 = vshll.u32 %v1630_v4, 23 }
 0x1c5   :  { %v1513_v2 = vshll.u32 %v1512_v6, 30  ;;  %vm1651_vm0 = vcmp.eq.s32.totalorder %v1646_v40, 2  ;;  %vm1648_vm1 = vcmp.eq.s32.totalorder %v1646_v40, 0  ;;  %vm1647_vm2 = vcmp.lt.s32.totalorder %v1646_v40, 2 }
 0x1c6   :  { %v1632_v9 = vor.u32 4788187, %v1631_v37  ;;  %v1635_v26 = vcvt.s32.f32 %v1628_v60  ;;  %v1536_v42 = vsub.s32 4, %v1512_v6 }
 0x1c7   :  { %v1514_v17 = vsub.s32 %v1510_v36, %v1513_v2 }
 0x1c8   :  { %v1633_v10 = vand.u32 2147483647, %v1632_v9 }
 0x1c9   :  { %v1516_v34 = vsub.s32 0, %v1514_v17 }
 0x1ca   :  { %v1636_v62 = vmul.f32 %v1635_v26, %v1633_v10 }
 0x1cb   :  { %v1695_v27 = vmin.u32 %v1516_v34, %v1514_v17 }
 0x1cc   :  { %v1637_v35 = vxor.u32 2147483648, %v1636_v62 }
 0x1cd   :  { %v1518_v51 = vclz %v1695_v27 }
 0x1ce   :  { %v1638_v16 = vsel %vm1555_vm13, %v1637_v35, %v1636_v62 }
 0x1cf   :  { %v1641_v0 = vsel %vm2795_vm14, %v2510_v59, %v1638_v16  ;;  %v1696_v47 = vadd.s32 4294967294, %v1518_v51  ;;  %v1537_v59 = vsel %vm1452_vm4, %v1536_v42, %v1512_v6 }
 0x1d0   :  { %1942 = vcosq.f32 %v1641_v0  ;;  %v1539_v43 = vsel %vm1451_vm5, 0, %v1537_v59 }
 0x1d1   :  { %1944 = vsinq.f32 %v1641_v0  ;;  %vm1697_vm15 = vcmp.lt.s32.totalorder %v1696_v47, 0  ;;  %v1543_v1 = vand.u32 3, %v1539_v43 }
 0x1d2   :  { %v1521_v45 = vsel %vm1697_vm15, 0, %v1696_v47 }
 0x1d3   :  { %v1522_v11 = vsub.s32 32, %v1521_v45  ;;  %v1526_v33 = vsub.s32 4294967266, %v1521_v45  ;;  %v1523_v63 = vshll.u32 %v1514_v17, %v1521_v45  ;;  %vm1548_vm6 = vcmp.eq.s32.totalorder %v1543_v1, 2 }
 0x1d4   :  { %vm1545_vm7 = vcmp.eq.s32.totalorder %v1543_v1, 0  ;;  %vm1544_vm8 = vcmp.lt.s32.totalorder %v1543_v1, 2 }
 0x1d5   :  { %v1524_v7 = vshrl.u32 %v1506_v3, %v1522_v11  ;;  %v1527_v50 = vadd.s32 127, %v1526_v33 }
 0x1d7   :  { %v1525_v57 = vor.u32 %v1524_v7, %v1523_v63  ;;  %v1528_v29 = vshll.u32 %v1527_v50, 23 }
 0x1d9   :  { %v1529_v14 = vor.u32 4788187, %v1528_v29  ;;  %v1532_v22 = vcvt.s32.f32 %v1525_v57 }
 0x1da   :  { %v1943_v41 = vpop.eup %1942 }
 0x1db   :  { %v1945_v56 = vpop.eup %1944  ;;  %v1652_v30 = vxor.u32 2147483648, %v1943_v41  ;;  %v1530_v38 = vand.u32 2147483647, %v1529_v14 }
 0x1dc   :  { %v1649_v53 = vxor.u32 2147483648, %v1945_v56 }
 0x1dd   :  { %v1653_v49 = vsel %vm1651_vm0, %v1652_v30, %v1945_v56  ;;  %v1533_v25 = vmul.f32 %v1532_v22, %v1530_v38 }
 0x1de   :  { %v1650_v32 = vsel %vm1648_vm1, %v1943_v41, %v1649_v53 }
 0x1df   :  { %v1654_v39 = vsel %vm1647_vm2, %v1650_v32, %v1653_v49  ;;  %v1534_v15 = vxor.u32 2147483648, %v1533_v25 }
 0x1e0   :  { %v1655_v48 = vsel %vm1645_vm3, nan, %v1654_v39 }
 0x1e1   :  { %1663 = vst [vmem:[%s2823_s4 + $0x38] sm:$0xff] %v1655_v48  ;;  %v1535_v58 = vsel %vm1452_vm4, %v1534_v15, %v1533_v25 }
 0x1e2   :  { %v1538_v44 = vsel %vm1451_vm5, %v2621_v12, %v1535_v58 }
 0x1e3   :  { %1946 = vcosq.f32 %v1538_v44 }
 0x1e4   :  { %1948 = vsinq.f32 %v1538_v44 }
 0x1ed   :  { %v1947_v55 = vpop.eup %1946 }
 0x1ee   :  { %v1949_v5 = vpop.eup %1948  ;;  %v1549_v13 = vxor.u32 2147483648, %v1947_v55 }
 0x1ef   :  { %v1546_v52 = vxor.u32 2147483648, %v1949_v5 }
 0x1f0   :  { %v1550_v46 = vsel %vm1548_vm6, %v1549_v13, %v1949_v5 }
 0x1f1   :  { %v1547_v20 = vsel %vm1545_vm7, %v1947_v55, %v1546_v52 }
 0x1f2   :  { %v1551_v19 = vsel %vm1544_vm8, %v1547_v20, %v1550_v46 }
 0x1f3   :  { %v1552_v31 = vsel %vm1542_vm9, nan, %v1551_v19 }
 0x1f4   :  { %1662 = vst [vmem:[%s2823_s4 + $0x30] sm:$0xff] %v1552_v31 }

</bundles_post_ra>
